<compile_context>
chip_gen: v7x
topology: tpu7x:2x2x1
jax: 0.10.0
libtpu: 0.0.40
codegen_flags: <defaults>
</compile_context>

<pallas_src>
import math
from functools import partial

import jax
import jax.numpy as jnp
import numpy as np
from jax.experimental import pallas as pl
from jax.experimental.pallas import tpu as pltpu

# Set to jnp.bfloat16 on v6e/v7x at realistic sizes for ~4x MXU throughput
# (softmax/LayerNorm statistics and accumulators stay in f32 regardless).
COMPUTE_DTYPE = jnp.float32
LN_EPS = 1e-5


# ----------------------------- in-kernel helpers ---------------------------- #

def _mm(a, b):
    """a @ b on the MXU with f32 accumulation."""
    return jnp.dot(a.astype(COMPUTE_DTYPE), b.astype(COMPUTE_DTYPE),
                   preferred_element_type=jnp.float32)


def _mm_nt(a, b):
    """a @ b.T (contract the last dim of both operands), f32 accumulation."""
    return jax.lax.dot_general(
        a.astype(COMPUTE_DTYPE), b.astype(COMPUTE_DTYPE),
        dimension_numbers=(((1,), (1,)), ((), ())),
        preferred_element_type=jnp.float32)


def _layer_norm(x, g, b):
    mu = jnp.mean(x, axis=-1, keepdims=True)
    xc = x - mu
    var = jnp.mean(xc * xc, axis=-1, keepdims=True)
    return xc * jax.lax.rsqrt(var + LN_EPS) * g + b


# --------------------------------- kernel ----------------------------------- #

def _decoder_kernel(n_heads,
                    x_ref, cos_ref, sin_ref,
                    ln1g_ref, ln1b_ref, wqkv_ref, bqkv_ref, wout_ref, bout_ref,
                    ln2g_ref, ln2b_ref, w12_ref, b12_ref, w3_ref, b3_ref,
                    lnfg_ref, lnfb_ref, wlm_ref,
                    o_ref, x_vmem):
    layer = pl.program_id(1)
    n_layers = pl.num_programs(1)

    # Load the embedded tokens for this batch element on the first layer step;
    # afterwards the activation is carried in VMEM scratch across layer steps.
    @pl.when(layer == 0)
    def _():
        x_vmem[...] = x_ref[...].astype(jnp.float32)

    x = x_vmem[...]                                   # (L, E) f32
    L, E = x.shape
    D = E // n_heads                                  # head dim
    D2 = D // 2
    E2 = E // 2

    # ----------------------------- attention ------------------------------- #
    xn = _layer_norm(x, ln1g_ref[...], ln1b_ref[...])
    qkv = _mm(xn, wqkv_ref[...]) + bqkv_ref[...]      # (L, 3E) f32
    # Column layout (packed offline): [q_even | q_odd | k_even | k_odd | v],
    # q columns pre-scaled by 1/sqrt(D).
    q1 = qkv[:, 0:E2]
    q2 = qkv[:, E2:E]
    k1 = qkv[:, E:E + E2]
    k2 = qkv[:, E + E2:2 * E]
    v = qkv[:, 2 * E:3 * E]

    cos = cos_ref[...]                                # (L, E/2)
    sin = sin_ref[...]
    qr1 = q1 * cos - q2 * sin                         # interleaved RoPE as pure
    qr2 = q2 * cos + q1 * sin                         # element-wise math (VPU),
    kr1 = k1 * cos - k2 * sin                         # no perm-matmul / XLU
    kr2 = k2 * cos + k1 * sin

    row = jax.lax.broadcasted_iota(jnp.int32, (L, L), 0)
    col = jax.lax.broadcasted_iota(jnp.int32, (L, L), 1)
    future = col > row                                # causal mask (is_causal)

    wo = wout_ref[...]                                # (E, E)
    attn = bout_ref[...].astype(jnp.float32)          # (1, E) -> broadcasts

    # NOTE: the full (L, L) score block is fine at L=8.  For long sequences
    # this loop should become a kv-block flash loop (online softmax, f32 acc
    # scratch) so VMEM scales with L*tk — mandatory on v7x (64 MiB VMEM).
    for h in range(n_heads):
        a0, a1 = h * D2, (h + 1) * D2
        s = (_mm_nt(qr1[:, a0:a1], kr1[:, a0:a1]) +
             _mm_nt(qr2[:, a0:a1], kr2[:, a0:a1]))    # (L, L); scale pre-folded
        s = jnp.where(future, -jnp.inf, s)
        m = jnp.max(s, axis=-1, keepdims=True)
        p = jnp.exp(s - m)
        p = p * pl.reciprocal(jnp.sum(p, axis=-1, keepdims=True), approx=True)
        ctx = _mm(p, v[:, h * D:(h + 1) * D])         # (L, D)
        # out-projection decomposed per head: sum_h ctx_h @ W_out[hD:(h+1)D, :]
        attn = attn + _mm(ctx, wo[h * D:(h + 1) * D, :])

    x = x + attn                                      # residual 1

    # ------------------------- SwiGLU feed-forward -------------------------- #
    xn2 = _layer_norm(x, ln2g_ref[...], ln2b_ref[...])
    h12 = _mm(xn2, w12_ref[...]) + b12_ref[...]       # (L, 2*dim_ff)
    dff = h12.shape[-1] // 2
    gate = h12[:, :dff]
    val = h12[:, dff:]
    act = gate * (1.0 / (1.0 + jnp.exp(-gate))) * val   # SiLU(gate) * value
    x = x + (_mm(act, w3_ref[...]) + b3_ref[...])     # residual 2

    x_vmem[...] = x

    # ------------------ final LayerNorm + tied LM head ---------------------- #
    @pl.when(layer == n_layers - 1)
    def _():
        xf = _layer_norm(x, lnfg_ref[...], lnfb_ref[...])
        o_ref[...] = _mm(xf, wlm_ref[...]).astype(o_ref.dtype)


# ------------------------------ param packing ------------------------------- #

def prepare_decoder_params(raw, *, n_heads, seq_len):
    """One-time (hoisted) packing: de-interleave + pre-scale QKV columns for the
    slab RoPE, reshape biases/LN params to lane rows, stack per-layer tensors
    along a leading layer axis, pre-transpose the tied LM-head weight, and
    build the RoPE tables once."""
    emb = raw["emb"]
    E = emb.shape[1]
    D = E // n_heads

    # column permutation: [q_even | q_odd | k_even | k_odd | v]
    even = np.concatenate([h * D + np.arange(0, D, 2) for h in range(n_heads)])
    odd = even + 1
    col_perm = np.concatenate([even, odd, E + even, E + odd, 2 * E + np.arange(E)])
    col_scale = np.ones((3 * E,), np.float32)
    col_scale[:E] = 1.0 / math.sqrt(D)        # fold the attention scale into q

    def row(t):                               # vector -> lane-dense (1, N)
        return jnp.asarray(t).reshape(1, -1)

    stk = lambda xs: jnp.stack(xs, axis=0)
    layers = raw["layers"]
    prep = {
        "ln1_g": stk([row(l["ln1_g"]) for l in layers]),
        "ln1_b": stk([row(l["ln1_b"]) for l in layers]),
        "w_qkv": stk([l["w_qkv"][:, col_perm] * col_scale for l in layers]),
        "b_qkv": stk([row(l["b_qkv"][col_perm] * col_scale) for l in layers]),
        "w_out": stk([l["w_out"] for l in layers]),
        "b_out": stk([row(l["b_out"]) for l in layers]),
        "ln2_g": stk([row(l["ln2_g"]) for l in layers]),
        "ln2_b": stk([row(l["ln2_b"]) for l in layers]),
        "w12":   stk([l["w12"] for l in layers]),
        "b12":   stk([row(l["b12"]) for l in layers]),
        "w3":    stk([l["w3"] for l in layers]),
        "b3":    stk([row(l["b3"]) for l in layers]),
        "lnf_g": row(raw["lnf_g"]),
        "lnf_b": row(raw["lnf_b"]),
        "w_lm":  jnp.asarray(emb).T,          # tied LM head, pre-transposed
    }

    # RoPE tables, tiled across heads to match the de-interleaved layout.
    inv_freq = 1.0 / (10000.0 ** (np.arange(0, D, 2, dtype=np.float32) / D))
    freqs = np.arange(seq_len, dtype=np.float32)[:, None] * inv_freq[None, :]
    prep["cos"] = jnp.asarray(np.tile(np.cos(freqs), (1, n_heads)).astype(np.float32))
    prep["sin"] = jnp.asarray(np.tile(np.sin(freqs), (1, n_heads)).astype(np.float32))
    return prep


# -------------------------------- forward ----------------------------------- #

def decoder_forward(input_ids, raw, prep, n_heads):
    """Full DecoderModel forward: embedding gather in the wrapper, then a single
    fused Pallas kernel for all decoder layers + final LN + LM head."""
    emb = raw["emb"]
    vocab, E = emb.shape
    B, L = input_ids.shape
    n_layers = prep["w_qkv"].shape[0]
    dff = prep["w3"].shape[1]
    E2 = E // 2

    # Token-embedding gather + sqrt(d_model) scale (data-dependent gather -> XLA).
    x = jnp.take(emb, input_ids, axis=0) * math.sqrt(E)      # (B, L, E)

    batch_spec = lambda shape: pl.BlockSpec((None,) + shape, lambda b, l: (b, 0, 0))
    const_spec = lambda shape: pl.BlockSpec(shape, lambda b, l: (0, 0))
    layer_spec = lambda shape: pl.BlockSpec((None,) + shape, lambda b, l: (l, 0, 0))

    in_specs = [
        batch_spec((L, E)),            # x (embedded tokens)
        const_spec((L, E2)),           # cos
        const_spec((L, E2)),           # sin
        layer_spec((1, E)),            # ln1_g
        layer_spec((1, E)),            # ln1_b
        layer_spec((E, 3 * E)),        # w_qkv (packed)
        layer_spec((1, 3 * E)),        # b_qkv (packed)
        layer_spec((E, E)),            # w_out
        layer_spec((1, E)),            # b_out
        layer_spec((1, E)),            # ln2_g
        layer_spec((1, E)),            # ln2_b
        layer_spec((E, 2 * dff)),      # w12
        layer_spec((1, 2 * dff)),      # b12
        layer_spec((dff, E)),          # w3
        layer_spec((1, E)),            # b3
        const_spec((1, E)),            # lnf_g
        const_spec((1, E)),            # lnf_b
        const_spec((E, vocab)),        # w_lm (tied, transposed)
    ]

    return pl.pallas_call(
        partial(_decoder_kernel, n_heads),
        out_shape=jax.ShapeDtypeStruct((B, L, vocab), x.dtype),
        grid=(B, n_layers),
        in_specs=in_specs,
        out_specs=pl.BlockSpec((None, L, vocab), lambda b, l: (b, 0, 0)),
        scratch_shapes=[pltpu.VMEM((L, E), jnp.float32)],
        compiler_params=pltpu.CompilerParams(
            dimension_semantics=("parallel", "arbitrary")),
    )(x, prep["cos"], prep["sin"],
      prep["ln1_g"], prep["ln1_b"], prep["w_qkv"], prep["b_qkv"],
      prep["w_out"], prep["b_out"],
      prep["ln2_g"], prep["ln2_b"], prep["w12"], prep["b12"],
      prep["w3"], prep["b3"],
      prep["lnf_g"], prep["lnf_b"], prep["w_lm"])


# ------------------------------- reference ---------------------------------- #

def reference_forward(input_ids, raw, n_heads):
    """Pure-jnp reference mirroring the PyTorch module (eval, no pad tokens).
    Uses the RAW (un-permuted, un-scaled) parameters with interleaved RoPE."""
    emb = raw["emb"]
    E = emb.shape[1]
    D = E // n_heads
    B, L = input_ids.shape

    x = emb[input_ids] * math.sqrt(E)

    inv_freq = 1.0 / (10000.0 ** (jnp.arange(0, D, 2, dtype=jnp.float32) / D))
    freqs = jnp.arange(L, dtype=jnp.float32)[:, None] * inv_freq[None, :]
    cos, sin = jnp.cos(freqs), jnp.sin(freqs)         # (L, D/2)

    def layer_norm(t, g, b):
        mu = jnp.mean(t, axis=-1, keepdims=True)
        var = jnp.mean((t - mu) ** 2, axis=-1, keepdims=True)
        return (t - mu) / jnp.sqrt(var + LN_EPS) * g + b

    def rope(t):                                      # (B, H, L, D) interleaved
        te, to = t[..., ::2], t[..., 1::2]
        re = te * cos - to * sin
        ro = te * sin + to * cos
        return jnp.stack([re, ro], axis=-1).reshape(t.shape)

    for lyr in raw["layers"]:
        xn = layer_norm(x, lyr["ln1_g"], lyr["ln1_b"])
        qkv = (xn @ lyr["w_qkv"] + lyr["b_qkv"]).reshape(B, L, 3, n_heads, D)
        q, k, v = [jnp.transpose(qkv[:, :, i], (0, 2, 1, 3)) for i in range(3)]
        q, k = rope(q), rope(k)
        s = jnp.einsum("bhld,bhmd->bhlm", q, k) / math.sqrt(D)
        causal = jnp.triu(jnp.ones((L, L), dtype=bool), 1)
        s = jnp.where(causal[None, None], -jnp.inf, s)
        p = jax.nn.softmax(s, axis=-1)
        ctx = jnp.einsum("bhlm,bhmd->bhld", p, v)
        ctx = jnp.transpose(ctx, (0, 2, 1, 3)).reshape(B, L, E)
        x = x + (ctx @ lyr["w_out"] + lyr["b_out"])

        xn = layer_norm(x, lyr["ln2_g"], lyr["ln2_b"])
        h12 = xn @ lyr["w12"] + lyr["b12"]
        dff = h12.shape[-1] // 2
        gate, val = h12[..., :dff], h12[..., dff:]
        x = x + ((gate * jax.nn.sigmoid(gate) * val) @ lyr["w3"] + lyr["b3"])

    xf = layer_norm(x, raw["lnf_g"], raw["lnf_b"])
    return xf @ emb.T


# --------------------------------- params ----------------------------------- #

def init_raw_params(key, *, vocab, d_model, n_heads, dim_ff, n_layers):
    """Linear weights stored as (in_features, out_features) (torch weight^T)."""
    k_emb, k_lnf, k_layers = jax.random.split(key, 3)
    emb = 0.1 * jax.random.normal(k_emb, (vocab, d_model), jnp.float32)
    emb = emb.at[0].set(0.0)                          # padding_idx = 0
    layers = []
    for kl in jax.random.split(k_layers, n_layers):
        ks = jax.random.split(kl, 12)
        layers.append({
            "ln1_g": 1.0 + 0.05 * jax.random.normal(ks[0], (d_model,), jnp.float32),
            "ln1_b": 0.02 * jax.random.normal(ks[1], (d_model,), jnp.float32),
            "w_qkv": 0.05 * jax.random.normal(ks[2], (d_model, 3 * d_model), jnp.float32),
            "b_qkv": 0.02 * jax.random.normal(ks[3], (3 * d_model,), jnp.float32),
            "w_out": 0.05 * jax.random.normal(ks[4], (d_model, d_model), jnp.float32),
            "b_out": 0.02 * jax.random.normal(ks[5], (d_model,), jnp.float32),
            "ln2_g": 1.0 + 0.05 * jax.random.normal(ks[6], (d_model,), jnp.float32),
            "ln2_b": 0.02 * jax.random.normal(ks[7], (d_model,), jnp.float32),
            "w12": 0.05 * jax.random.normal(ks[8], (d_model, 2 * dim_ff), jnp.float32),
            "b12": 0.02 * jax.random.normal(ks[9], (2 * dim_ff,), jnp.float32),
            "w3": 0.05 * jax.random.normal(ks[10], (dim_ff, d_model), jnp.float32),
            "b3": 0.02 * jax.random.normal(ks[11], (d_model,), jnp.float32),
        })
    kg, kb = jax.random.split(k_lnf)
    lnf_g = 1.0 + 0.05 * jax.random.normal(kg, (d_model,), jnp.float32)
    lnf_b = 0.02 * jax.random.normal(kb, (d_model,), jnp.float32)
    return {"emb": emb, "layers": layers, "lnf_g": lnf_g, "lnf_b": lnf_b}


# ---------------------------------- main ------------------------------------ #

if __name__ == "__main__":
    B, L = 2, 8
    VOCAB, D_MODEL, N_HEADS, DIM_FF, N_LAYERS = 64, 32, 4, 128, 2

    key = jax.random.PRNGKey(0)
    k_params, k_ids = jax.random.split(key)
    raw = init_raw_params(k_params, vocab=VOCAB, d_model=D_MODEL,
                          n_heads=N_HEADS, dim_ff=DIM_FF, n_layers=N_LAYERS)
    # token ids in [1, VOCAB): no pad tokens -> the module's empty-pad-mask path
    input_ids = jax.random.randint(k_ids, (B, L), 1, VOCAB)

    # Offline packing + RoPE tables, hoisted out of the forward path.
    prep = prepare_decoder_params(raw, n_heads=N_HEADS, seq_len=L)

    logits = decoder_forward(input_ids, raw, prep, N_HEADS)
    logits = jax.block_until_ready(logits)

    ref = reference_forward(input_ids, raw, N_HEADS)
    assert logits.shape == (B, L, VOCAB)
    max_err = float(jnp.max(jnp.abs(logits - ref)))
    # f32 throughout; the only deliberate approximation is the EUP approximate
    # reciprocal in the softmax, which stays well inside this tolerance.
    assert jnp.allclose(logits, ref, atol=5e-3, rtol=5e-3), max_err
    print("KERNEL_OK")
</pallas_src>

<mosaic_0001>
module attributes {stable_mosaic.version = 11 : i64} {
  func.func @_decoder_kernel(%arg0: i32, %arg1: i32, %arg2: memref<1x8x32xf32, #tpu.memory_space<vmem>>, %arg3: memref<8x16xf32, #tpu.memory_space<vmem>>, %arg4: memref<8x16xf32, #tpu.memory_space<vmem>>, %arg5: memref<1x1x32xf32, #tpu.memory_space<vmem>>, %arg6: memref<1x1x32xf32, #tpu.memory_space<vmem>>, %arg7: memref<1x32x96xf32, #tpu.memory_space<vmem>>, %arg8: memref<1x1x96xf32, #tpu.memory_space<vmem>>, %arg9: memref<1x32x32xf32, #tpu.memory_space<vmem>>, %arg10: memref<1x1x32xf32, #tpu.memory_space<vmem>>, %arg11: memref<1x1x32xf32, #tpu.memory_space<vmem>>, %arg12: memref<1x1x32xf32, #tpu.memory_space<vmem>>, %arg13: memref<1x32x256xf32, #tpu.memory_space<vmem>>, %arg14: memref<1x1x256xf32, #tpu.memory_space<vmem>>, %arg15: memref<1x128x32xf32, #tpu.memory_space<vmem>>, %arg16: memref<1x1x32xf32, #tpu.memory_space<vmem>>, %arg17: memref<1x32xf32, #tpu.memory_space<vmem>>, %arg18: memref<1x32xf32, #tpu.memory_space<vmem>>, %arg19: memref<32x64xf32, #tpu.memory_space<vmem>>, %arg20: memref<1x8x64xf32, #tpu.memory_space<vmem>>, %arg21: memref<8x32xf32, #tpu.memory_space<vmem>>) attributes {dimension_semantics = [#tpu.dimension_semantics<parallel>, #tpu.dimension_semantics<arbitrary>], iteration_bounds = array<i64: 2, 2>, scalar_prefetch = 0 : i64, scratch_operands = 1 : i64, tpu.core_type = #tpu.core_type<tc>, window_params = [{transform_indices = @transform_0, window_bounds = array<i64: 1, 8, 32>}, {pipeline_mode = #tpu.pipeline_mode<synchronous>, transform_indices = @transform_1, window_bounds = array<i64: 8, 16>}, {pipeline_mode = #tpu.pipeline_mode<synchronous>, transform_indices = @transform_2, window_bounds = array<i64: 8, 16>}, {transform_indices = @transform_3, window_bounds = array<i64: 1, 1, 32>}, {transform_indices = @transform_4, window_bounds = array<i64: 1, 1, 32>}, {transform_indices = @transform_5, window_bounds = array<i64: 1, 32, 96>}, {transform_indices = @transform_6, window_bounds = array<i64: 1, 1, 96>}, {transform_indices = @transform_7, window_bounds = array<i64: 1, 32, 32>}, {transform_indices = @transform_8, window_bounds = array<i64: 1, 1, 32>}, {transform_indices = @transform_9, window_bounds = array<i64: 1, 1, 32>}, {transform_indices = @transform_10, window_bounds = array<i64: 1, 1, 32>}, {transform_indices = @transform_11, window_bounds = array<i64: 1, 32, 256>}, {transform_indices = @transform_12, window_bounds = array<i64: 1, 1, 256>}, {transform_indices = @transform_13, window_bounds = array<i64: 1, 128, 32>}, {transform_indices = @transform_14, window_bounds = array<i64: 1, 1, 32>}, {pipeline_mode = #tpu.pipeline_mode<synchronous>, transform_indices = @transform_15, window_bounds = array<i64: 1, 32>}, {pipeline_mode = #tpu.pipeline_mode<synchronous>, transform_indices = @transform_16, window_bounds = array<i64: 1, 32>}, {pipeline_mode = #tpu.pipeline_mode<synchronous>, transform_indices = @transform_17, window_bounds = array<i64: 32, 64>}, {transform_indices = @transform_18, window_bounds = array<i64: 1, 8, 64>}]} {
    %c0_i32 = arith.constant 0 : i32
    %0 = arith.cmpi eq, %arg1, %c0_i32 : i32
    %1 = arith.extui %0 : i1 to i32
    %c0_i32_0 = arith.constant 0 : i32
    %2 = arith.cmpi ne, %1, %c0_i32_0 : i32
    scf.if %2 {
      %c0_88 = arith.constant 0 : index
      %c0_89 = arith.constant 0 : index
      %c0_90 = arith.constant 0 : index
      %213 = vector.load %arg2[%c0_88, %c0_89, %c0_90] : memref<1x8x32xf32, #tpu.memory_space<vmem>>, vector<1x8x32xf32>
      %214 = vector.shape_cast %213 : vector<1x8x32xf32> to vector<8x32xf32>
      %c0_91 = arith.constant 0 : index
      %c0_92 = arith.constant 0 : index
      %215 = vector.load %arg21[%c0_91, %c0_92] : memref<8x32xf32, #tpu.memory_space<vmem>>, vector<8x32xf32>
      tpu.vector_store %arg21[%c0_91, %c0_92], %214 {strides = array<i32>} : memref<8x32xf32, #tpu.memory_space<vmem>>, vector<8x32xf32>,
    } else {
    }
    %c0 = arith.constant 0 : index
    %c0_1 = arith.constant 0 : index
    %3 = vector.load %arg21[%c0, %c0_1] : memref<8x32xf32, #tpu.memory_space<vmem>>, vector<8x32xf32>
    %c0_2 = arith.constant 0 : index
    %c0_3 = arith.constant 0 : index
    %c0_4 = arith.constant 0 : index
    %4 = vector.load %arg5[%c0_2, %c0_3, %c0_4] : memref<1x1x32xf32, #tpu.memory_space<vmem>>, vector<1x1x32xf32>
    %5 = vector.shape_cast %4 : vector<1x1x32xf32> to vector<1x32xf32>
    %c0_5 = arith.constant 0 : index
    %c0_6 = arith.constant 0 : index
    %c0_7 = arith.constant 0 : index
    %6 = vector.load %arg6[%c0_5, %c0_6, %c0_7] : memref<1x1x32xf32, #tpu.memory_space<vmem>>, vector<1x1x32xf32>
    %7 = vector.shape_cast %6 : vector<1x1x32xf32> to vector<1x32xf32>
    %cst = arith.constant dense<0.000000e+00> : vector<8xf32>
    %8 = vector.multi_reduction <add>, %3, %cst [1] : vector<8x32xf32> to vector<8xf32>
    %9 = vector.shape_cast %8 : vector<8xf32> to vector<8x1xf32>
    %cst_8 = arith.constant 3.200000e+01 : f32
    %10 = vector.broadcast %cst_8 : f32 to vector<8x1xf32>
    %11 = arith.divf %9, %10 : vector<8x1xf32>
    %12 = vector.broadcast %11 : vector<8x1xf32> to vector<8x32xf32>
    %13 = arith.subf %3, %12 : vector<8x32xf32>
    %14 = arith.mulf %13, %13 : vector<8x32xf32>
    %cst_9 = arith.constant dense<0.000000e+00> : vector<8xf32>
    %15 = vector.multi_reduction <add>, %14, %cst_9 [1] : vector<8x32xf32> to vector<8xf32>
    %16 = vector.shape_cast %15 : vector<8xf32> to vector<8x1xf32>
    %cst_10 = arith.constant 3.200000e+01 : f32
    %17 = vector.broadcast %cst_10 : f32 to vector<8x1xf32>
    %18 = arith.divf %16, %17 : vector<8x1xf32>
    %cst_11 = arith.constant 9.99999974E-6 : f32
    %19 = vector.broadcast %cst_11 : f32 to vector<8x1xf32>
    %20 = arith.addf %18, %19 : vector<8x1xf32>
    %21 = math.rsqrt %20 : vector<8x1xf32>
    %22 = vector.broadcast %21 : vector<8x1xf32> to vector<8x32xf32>
    %23 = arith.mulf %13, %22 : vector<8x32xf32>
    %24 = vector.broadcast %5 : vector<1x32xf32> to vector<8x32xf32>
    %25 = arith.mulf %23, %24 : vector<8x32xf32>
    %26 = vector.broadcast %7 : vector<1x32xf32> to vector<8x32xf32>
    %27 = arith.addf %25, %26 : vector<8x32xf32>
    %c0_12 = arith.constant 0 : index
    %c0_13 = arith.constant 0 : index
    %c0_14 = arith.constant 0 : index
    %28 = vector.load %arg7[%c0_12, %c0_13, %c0_14] : memref<1x32x96xf32, #tpu.memory_space<vmem>>, vector<1x32x96xf32>
    %29 = vector.shape_cast %28 : vector<1x32x96xf32> to vector<32x96xf32>
    %cst_15 = arith.constant dense<0.000000e+00> : vector<8x96xf32>
    %30 = tpu.matmul %27, %29, %cst_15 {dimension_numbers = #tpu.dot_dimension_numbers<[1], [0], [0], [1], [0, 0, 1, 1], [], []>} : vector<8x32xf32>, vector<32x96xf32>, vector<8x96xf32> -> vector<8x96xf32>
    %c0_16 = arith.constant 0 : index
    %c0_17 = arith.constant 0 : index
    %c0_18 = arith.constant 0 : index
    %31 = vector.load %arg8[%c0_16, %c0_17, %c0_18] : memref<1x1x96xf32, #tpu.memory_space<vmem>>, vector<1x1x96xf32>
    %32 = vector.shape_cast %31 : vector<1x1x96xf32> to vector<1x96xf32>
    %33 = vector.broadcast %32 : vector<1x96xf32> to vector<8x96xf32>
    %34 = arith.addf %30, %33 : vector<8x96xf32>
    %35 = vector.extract_strided_slice %34 {offsets = [0, 0], sizes = [8, 16], strides = [1, 1]} : vector<8x96xf32> to vector<8x16xf32>
    %36 = vector.extract_strided_slice %34 {offsets = [0, 16], sizes = [8, 16], strides = [1, 1]} : vector<8x96xf32> to vector<8x16xf32>
    %37 = vector.extract_strided_slice %34 {offsets = [0, 32], sizes = [8, 16], strides = [1, 1]} : vector<8x96xf32> to vector<8x16xf32>
    %38 = vector.extract_strided_slice %34 {offsets = [0, 48], sizes = [8, 16], strides = [1, 1]} : vector<8x96xf32> to vector<8x16xf32>
    %39 = vector.extract_strided_slice %34 {offsets = [0, 64], sizes = [8, 32], strides = [1, 1]} : vector<8x96xf32> to vector<8x32xf32>
    %c0_19 = arith.constant 0 : index
    %c0_20 = arith.constant 0 : index
    %40 = vector.load %arg3[%c0_19, %c0_20] : memref<8x16xf32, #tpu.memory_space<vmem>>, vector<8x16xf32>
    %c0_21 = arith.constant 0 : index
    %c0_22 = arith.constant 0 : index
    %41 = vector.load %arg4[%c0_21, %c0_22] : memref<8x16xf32, #tpu.memory_space<vmem>>, vector<8x16xf32>
    %42 = arith.mulf %35, %40 : vector<8x16xf32>
    %43 = arith.mulf %36, %41 : vector<8x16xf32>
    %44 = arith.subf %42, %43 : vector<8x16xf32>
    %45 = arith.mulf %36, %40 : vector<8x16xf32>
    %46 = arith.mulf %35, %41 : vector<8x16xf32>
    %47 = arith.addf %45, %46 : vector<8x16xf32>
    %48 = arith.mulf %37, %40 : vector<8x16xf32>
    %49 = arith.mulf %38, %41 : vector<8x16xf32>
    %50 = arith.subf %48, %49 : vector<8x16xf32>
    %51 = arith.mulf %38, %40 : vector<8x16xf32>
    %52 = arith.mulf %37, %41 : vector<8x16xf32>
    %53 = arith.addf %51, %52 : vector<8x16xf32>
    %54 = tpu.iota {dimensions = array<i32: 0>} : vector<8x8xi32>
    %55 = tpu.iota {dimensions = array<i32: 1>} : vector<8x8xi32>
    %56 = arith.cmpi sgt, %55, %54 : vector<8x8xi32>
    %c0_23 = arith.constant 0 : index
    %c0_24 = arith.constant 0 : index
    %c0_25 = arith.constant 0 : index
    %57 = vector.load %arg9[%c0_23, %c0_24, %c0_25] : memref<1x32x32xf32, #tpu.memory_space<vmem>>, vector<1x32x32xf32>
    %58 = vector.shape_cast %57 : vector<1x32x32xf32> to vector<32x32xf32>
    %c0_26 = arith.constant 0 : index
    %c0_27 = arith.constant 0 : index
    %c0_28 = arith.constant 0 : index
    %59 = vector.load %arg10[%c0_26, %c0_27, %c0_28] : memref<1x1x32xf32, #tpu.memory_space<vmem>>, vector<1x1x32xf32>
    %60 = vector.shape_cast %59 : vector<1x1x32xf32> to vector<1x32xf32>
    %61 = vector.extract_strided_slice %44 {offsets = [0, 0], sizes = [8, 4], strides = [1, 1]} : vector<8x16xf32> to vector<8x4xf32>
    %62 = vector.extract_strided_slice %50 {offsets = [0, 0], sizes = [8, 4], strides = [1, 1]} : vector<8x16xf32> to vector<8x4xf32>
    %cst_29 = arith.constant dense<0.000000e+00> : vector<8x8xf32>
    %63 = tpu.matmul %61, %62, %cst_29 {dimension_numbers = #tpu.dot_dimension_numbers<[1], [1], [0], [0], [0, 0, 1, 0], [], []>} : vector<8x4xf32>, vector<8x4xf32>, vector<8x8xf32> -> vector<8x8xf32>
    %64 = vector.extract_strided_slice %47 {offsets = [0, 0], sizes = [8, 4], strides = [1, 1]} : vector<8x16xf32> to vector<8x4xf32>
    %65 = vector.extract_strided_slice %53 {offsets = [0, 0], sizes = [8, 4], strides = [1, 1]} : vector<8x16xf32> to vector<8x4xf32>
    %cst_30 = arith.constant dense<0.000000e+00> : vector<8x8xf32>
    %66 = tpu.matmul %64, %65, %cst_30 {dimension_numbers = #tpu.dot_dimension_numbers<[1], [1], [0], [0], [0, 0, 1, 0], [], []>} : vector<8x4xf32>, vector<8x4xf32>, vector<8x8xf32> -> vector<8x8xf32>
    %67 = arith.addf %63, %66 : vector<8x8xf32>
    %cst_31 = arith.constant 0xFF800000 : f32
    %68 = vector.broadcast %cst_31 : f32 to vector<8x8xf32>
    %69 = arith.select %56, %68, %67 : vector<8x8xi1>, vector<8x8xf32>
    %cst_32 = arith.constant dense<0xFF800000> : vector<8xf32>
    %70 = vector.multi_reduction <maximumf>, %69, %cst_32 [1] : vector<8x8xf32> to vector<8xf32>
    %71 = vector.shape_cast %70 : vector<8xf32> to vector<8x1xf32>
    %72 = vector.broadcast %71 : vector<8x1xf32> to vector<8x8xf32>
    %73 = arith.subf %69, %72 : vector<8x8xf32>
    %74 = math.exp %73 : vector<8x8xf32>
    %cst_33 = arith.constant dense<0.000000e+00> : vector<8xf32>
    %75 = vector.multi_reduction <add>, %74, %cst_33 [1] : vector<8x8xf32> to vector<8xf32>
    %76 = vector.shape_cast %75 : vector<8xf32> to vector<8x1xf32>
    %77 = tpu.reciprocal %76 {approx = true} : vector<8x1xf32> -> vector<8x1xf32>
    %78 = vector.broadcast %77 : vector<8x1xf32> to vector<8x8xf32>
    %79 = arith.mulf %74, %78 : vector<8x8xf32>
    %80 = vector.extract_strided_slice %39 {offsets = [0, 0], sizes = [8, 8], strides = [1, 1]} : vector<8x32xf32> to vector<8x8xf32>
    %cst_34 = arith.constant dense<0.000000e+00> : vector<8x8xf32>
    %81 = tpu.matmul %79, %80, %cst_34 {dimension_numbers = #tpu.dot_dimension_numbers<[1], [0], [0], [1], [0, 0, 1, 1], [], []>} : vector<8x8xf32>, vector<8x8xf32>, vector<8x8xf32> -> vector<8x8xf32>
    %82 = vector.extract_strided_slice %58 {offsets = [0, 0], sizes = [8, 32], strides = [1, 1]} : vector<32x32xf32> to vector<8x32xf32>
    %cst_35 = arith.constant dense<0.000000e+00> : vector<8x32xf32>
    %83 = tpu.matmul %81, %82, %cst_35 {dimension_numbers = #tpu.dot_dimension_numbers<[1], [0], [0], [1], [0, 0, 1, 1], [], []>} : vector<8x8xf32>, vector<8x32xf32>, vector<8x32xf32> -> vector<8x32xf32>
    %84 = vector.broadcast %60 : vector<1x32xf32> to vector<8x32xf32>
    %85 = arith.addf %84, %83 : vector<8x32xf32>
    %86 = vector.extract_strided_slice %44 {offsets = [0, 4], sizes = [8, 4], strides = [1, 1]} : vector<8x16xf32> to vector<8x4xf32>
    %87 = vector.extract_strided_slice %50 {offsets = [0, 4], sizes = [8, 4], strides = [1, 1]} : vector<8x16xf32> to vector<8x4xf32>
    %cst_36 = arith.constant dense<0.000000e+00> : vector<8x8xf32>
    %88 = tpu.matmul %86, %87, %cst_36 {dimension_numbers = #tpu.dot_dimension_numbers<[1], [1], [0], [0], [0, 0, 1, 0], [], []>} : vector<8x4xf32>, vector<8x4xf32>, vector<8x8xf32> -> vector<8x8xf32>
    %89 = vector.extract_strided_slice %47 {offsets = [0, 4], sizes = [8, 4], strides = [1, 1]} : vector<8x16xf32> to vector<8x4xf32>
    %90 = vector.extract_strided_slice %53 {offsets = [0, 4], sizes = [8, 4], strides = [1, 1]} : vector<8x16xf32> to vector<8x4xf32>
    %cst_37 = arith.constant dense<0.000000e+00> : vector<8x8xf32>
    %91 = tpu.matmul %89, %90, %cst_37 {dimension_numbers = #tpu.dot_dimension_numbers<[1], [1], [0], [0], [0, 0, 1, 0], [], []>} : vector<8x4xf32>, vector<8x4xf32>, vector<8x8xf32> -> vector<8x8xf32>
    %92 = arith.addf %88, %91 : vector<8x8xf32>
    %cst_38 = arith.constant 0xFF800000 : f32
    %93 = vector.broadcast %cst_38 : f32 to vector<8x8xf32>
    %94 = arith.select %56, %93, %92 : vector<8x8xi1>, vector<8x8xf32>
    %cst_39 = arith.constant dense<0xFF800000> : vector<8xf32>
    %95 = vector.multi_reduction <maximumf>, %94, %cst_39 [1] : vector<8x8xf32> to vector<8xf32>
    %96 = vector.shape_cast %95 : vector<8xf32> to vector<8x1xf32>
    %97 = vector.broadcast %96 : vector<8x1xf32> to vector<8x8xf32>
    %98 = arith.subf %94, %97 : vector<8x8xf32>
    %99 = math.exp %98 : vector<8x8xf32>
    %cst_40 = arith.constant dense<0.000000e+00> : vector<8xf32>
    %100 = vector.multi_reduction <add>, %99, %cst_40 [1] : vector<8x8xf32> to vector<8xf32>
    %101 = vector.shape_cast %100 : vector<8xf32> to vector<8x1xf32>
    %102 = tpu.reciprocal %101 {approx = true} : vector<8x1xf32> -> vector<8x1xf32>
    %103 = vector.broadcast %102 : vector<8x1xf32> to vector<8x8xf32>
    %104 = arith.mulf %99, %103 : vector<8x8xf32>
    %105 = vector.extract_strided_slice %39 {offsets = [0, 8], sizes = [8, 8], strides = [1, 1]} : vector<8x32xf32> to vector<8x8xf32>
    %cst_41 = arith.constant dense<0.000000e+00> : vector<8x8xf32>
    %106 = tpu.matmul %104, %105, %cst_41 {dimension_numbers = #tpu.dot_dimension_numbers<[1], [0], [0], [1], [0, 0, 1, 1], [], []>} : vector<8x8xf32>, vector<8x8xf32>, vector<8x8xf32> -> vector<8x8xf32>
    %107 = vector.extract_strided_slice %58 {offsets = [8, 0], sizes = [8, 32], strides = [1, 1]} : vector<32x32xf32> to vector<8x32xf32>
    %cst_42 = arith.constant dense<0.000000e+00> : vector<8x32xf32>
    %108 = tpu.matmul %106, %107, %cst_42 {dimension_numbers = #tpu.dot_dimension_numbers<[1], [0], [0], [1], [0, 0, 1, 1], [], []>} : vector<8x8xf32>, vector<8x32xf32>, vector<8x32xf32> -> vector<8x32xf32>
    %109 = arith.addf %85, %108 : vector<8x32xf32>
    %110 = vector.extract_strided_slice %44 {offsets = [0, 8], sizes = [8, 4], strides = [1, 1]} : vector<8x16xf32> to vector<8x4xf32>
    %111 = vector.extract_strided_slice %50 {offsets = [0, 8], sizes = [8, 4], strides = [1, 1]} : vector<8x16xf32> to vector<8x4xf32>
    %cst_43 = arith.constant dense<0.000000e+00> : vector<8x8xf32>
    %112 = tpu.matmul %110, %111, %cst_43 {dimension_numbers = #tpu.dot_dimension_numbers<[1], [1], [0], [0], [0, 0, 1, 0], [], []>} : vector<8x4xf32>, vector<8x4xf32>, vector<8x8xf32> -> vector<8x8xf32>
    %113 = vector.extract_strided_slice %47 {offsets = [0, 8], sizes = [8, 4], strides = [1, 1]} : vector<8x16xf32> to vector<8x4xf32>
    %114 = vector.extract_strided_slice %53 {offsets = [0, 8], sizes = [8, 4], strides = [1, 1]} : vector<8x16xf32> to vector<8x4xf32>
    %cst_44 = arith.constant dense<0.000000e+00> : vector<8x8xf32>
    %115 = tpu.matmul %113, %114, %cst_44 {dimension_numbers = #tpu.dot_dimension_numbers<[1], [1], [0], [0], [0, 0, 1, 0], [], []>} : vector<8x4xf32>, vector<8x4xf32>, vector<8x8xf32> -> vector<8x8xf32>
    %116 = arith.addf %112, %115 : vector<8x8xf32>
    %cst_45 = arith.constant 0xFF800000 : f32
    %117 = vector.broadcast %cst_45 : f32 to vector<8x8xf32>
    %118 = arith.select %56, %117, %116 : vector<8x8xi1>, vector<8x8xf32>
    %cst_46 = arith.constant dense<0xFF800000> : vector<8xf32>
    %119 = vector.multi_reduction <maximumf>, %118, %cst_46 [1] : vector<8x8xf32> to vector<8xf32>
    %120 = vector.shape_cast %119 : vector<8xf32> to vector<8x1xf32>
    %121 = vector.broadcast %120 : vector<8x1xf32> to vector<8x8xf32>
    %122 = arith.subf %118, %121 : vector<8x8xf32>
    %123 = math.exp %122 : vector<8x8xf32>
    %cst_47 = arith.constant dense<0.000000e+00> : vector<8xf32>
    %124 = vector.multi_reduction <add>, %123, %cst_47 [1] : vector<8x8xf32> to vector<8xf32>
    %125 = vector.shape_cast %124 : vector<8xf32> to vector<8x1xf32>
    %126 = tpu.reciprocal %125 {approx = true} : vector<8x1xf32> -> vector<8x1xf32>
    %127 = vector.broadcast %126 : vector<8x1xf32> to vector<8x8xf32>
    %128 = arith.mulf %123, %127 : vector<8x8xf32>
    %129 = vector.extract_strided_slice %39 {offsets = [0, 16], sizes = [8, 8], strides = [1, 1]} : vector<8x32xf32> to vector<8x8xf32>
    %cst_48 = arith.constant dense<0.000000e+00> : vector<8x8xf32>
    %130 = tpu.matmul %128, %129, %cst_48 {dimension_numbers = #tpu.dot_dimension_numbers<[1], [0], [0], [1], [0, 0, 1, 1], [], []>} : vector<8x8xf32>, vector<8x8xf32>, vector<8x8xf32> -> vector<8x8xf32>
    %131 = vector.extract_strided_slice %58 {offsets = [16, 0], sizes = [8, 32], strides = [1, 1]} : vector<32x32xf32> to vector<8x32xf32>
    %cst_49 = arith.constant dense<0.000000e+00> : vector<8x32xf32>
    %132 = tpu.matmul %130, %131, %cst_49 {dimension_numbers = #tpu.dot_dimension_numbers<[1], [0], [0], [1], [0, 0, 1, 1], [], []>} : vector<8x8xf32>, vector<8x32xf32>, vector<8x32xf32> -> vector<8x32xf32>
    %133 = arith.addf %109, %132 : vector<8x32xf32>
    %134 = vector.extract_strided_slice %44 {offsets = [0, 12], sizes = [8, 4], strides = [1, 1]} : vector<8x16xf32> to vector<8x4xf32>
    %135 = vector.extract_strided_slice %50 {offsets = [0, 12], sizes = [8, 4], strides = [1, 1]} : vector<8x16xf32> to vector<8x4xf32>
    %cst_50 = arith.constant dense<0.000000e+00> : vector<8x8xf32>
    %136 = tpu.matmul %134, %135, %cst_50 {dimension_numbers = #tpu.dot_dimension_numbers<[1], [1], [0], [0], [0, 0, 1, 0], [], []>} : vector<8x4xf32>, vector<8x4xf32>, vector<8x8xf32> -> vector<8x8xf32>
    %137 = vector.extract_strided_slice %47 {offsets = [0, 12], sizes = [8, 4], strides = [1, 1]} : vector<8x16xf32> to vector<8x4xf32>
    %138 = vector.extract_strided_slice %53 {offsets = [0, 12], sizes = [8, 4], strides = [1, 1]} : vector<8x16xf32> to vector<8x4xf32>
    %cst_51 = arith.constant dense<0.000000e+00> : vector<8x8xf32>
    %139 = tpu.matmul %137, %138, %cst_51 {dimension_numbers = #tpu.dot_dimension_numbers<[1], [1], [0], [0], [0, 0, 1, 0], [], []>} : vector<8x4xf32>, vector<8x4xf32>, vector<8x8xf32> -> vector<8x8xf32>
    %140 = arith.addf %136, %139 : vector<8x8xf32>
    %cst_52 = arith.constant 0xFF800000 : f32
    %141 = vector.broadcast %cst_52 : f32 to vector<8x8xf32>
    %142 = arith.select %56, %141, %140 : vector<8x8xi1>, vector<8x8xf32>
    %cst_53 = arith.constant dense<0xFF800000> : vector<8xf32>
    %143 = vector.multi_reduction <maximumf>, %142, %cst_53 [1] : vector<8x8xf32> to vector<8xf32>
    %144 = vector.shape_cast %143 : vector<8xf32> to vector<8x1xf32>
    %145 = vector.broadcast %144 : vector<8x1xf32> to vector<8x8xf32>
    %146 = arith.subf %142, %145 : vector<8x8xf32>
    %147 = math.exp %146 : vector<8x8xf32>
    %cst_54 = arith.constant dense<0.000000e+00> : vector<8xf32>
    %148 = vector.multi_reduction <add>, %147, %cst_54 [1] : vector<8x8xf32> to vector<8xf32>
    %149 = vector.shape_cast %148 : vector<8xf32> to vector<8x1xf32>
    %150 = tpu.reciprocal %149 {approx = true} : vector<8x1xf32> -> vector<8x1xf32>
    %151 = vector.broadcast %150 : vector<8x1xf32> to vector<8x8xf32>
    %152 = arith.mulf %147, %151 : vector<8x8xf32>
    %153 = vector.extract_strided_slice %39 {offsets = [0, 24], sizes = [8, 8], strides = [1, 1]} : vector<8x32xf32> to vector<8x8xf32>
    %cst_55 = arith.constant dense<0.000000e+00> : vector<8x8xf32>
    %154 = tpu.matmul %152, %153, %cst_55 {dimension_numbers = #tpu.dot_dimension_numbers<[1], [0], [0], [1], [0, 0, 1, 1], [], []>} : vector<8x8xf32>, vector<8x8xf32>, vector<8x8xf32> -> vector<8x8xf32>
    %155 = vector.extract_strided_slice %58 {offsets = [24, 0], sizes = [8, 32], strides = [1, 1]} : vector<32x32xf32> to vector<8x32xf32>
    %cst_56 = arith.constant dense<0.000000e+00> : vector<8x32xf32>
    %156 = tpu.matmul %154, %155, %cst_56 {dimension_numbers = #tpu.dot_dimension_numbers<[1], [0], [0], [1], [0, 0, 1, 1], [], []>} : vector<8x8xf32>, vector<8x32xf32>, vector<8x32xf32> -> vector<8x32xf32>
    %157 = arith.addf %133, %156 : vector<8x32xf32>
    %158 = arith.addf %3, %157 : vector<8x32xf32>
    %c0_57 = arith.constant 0 : index
    %c0_58 = arith.constant 0 : index
    %c0_59 = arith.constant 0 : index
    %159 = vector.load %arg11[%c0_57, %c0_58, %c0_59] : memref<1x1x32xf32, #tpu.memory_space<vmem>>, vector<1x1x32xf32>
    %160 = vector.shape_cast %159 : vector<1x1x32xf32> to vector<1x32xf32>
    %c0_60 = arith.constant 0 : index
    %c0_61 = arith.constant 0 : index
    %c0_62 = arith.constant 0 : index
    %161 = vector.load %arg12[%c0_60, %c0_61, %c0_62] : memref<1x1x32xf32, #tpu.memory_space<vmem>>, vector<1x1x32xf32>
    %162 = vector.shape_cast %161 : vector<1x1x32xf32> to vector<1x32xf32>
    %cst_63 = arith.constant dense<0.000000e+00> : vector<8xf32>
    %163 = vector.multi_reduction <add>, %158, %cst_63 [1] : vector<8x32xf32> to vector<8xf32>
    %164 = vector.shape_cast %163 : vector<8xf32> to vector<8x1xf32>
    %cst_64 = arith.constant 3.200000e+01 : f32
    %165 = vector.broadcast %cst_64 : f32 to vector<8x1xf32>
    %166 = arith.divf %164, %165 : vector<8x1xf32>
    %167 = vector.broadcast %166 : vector<8x1xf32> to vector<8x32xf32>
    %168 = arith.subf %158, %167 : vector<8x32xf32>
    %169 = arith.mulf %168, %168 : vector<8x32xf32>
    %cst_65 = arith.constant dense<0.000000e+00> : vector<8xf32>
    %170 = vector.multi_reduction <add>, %169, %cst_65 [1] : vector<8x32xf32> to vector<8xf32>
    %171 = vector.shape_cast %170 : vector<8xf32> to vector<8x1xf32>
    %cst_66 = arith.constant 3.200000e+01 : f32
    %172 = vector.broadcast %cst_66 : f32 to vector<8x1xf32>
    %173 = arith.divf %171, %172 : vector<8x1xf32>
    %cst_67 = arith.constant 9.99999974E-6 : f32
    %174 = vector.broadcast %cst_67 : f32 to vector<8x1xf32>
    %175 = arith.addf %173, %174 : vector<8x1xf32>
    %176 = math.rsqrt %175 : vector<8x1xf32>
    %177 = vector.broadcast %176 : vector<8x1xf32> to vector<8x32xf32>
    %178 = arith.mulf %168, %177 : vector<8x32xf32>
    %179 = vector.broadcast %160 : vector<1x32xf32> to vector<8x32xf32>
    %180 = arith.mulf %178, %179 : vector<8x32xf32>
    %181 = vector.broadcast %162 : vector<1x32xf32> to vector<8x32xf32>
    %182 = arith.addf %180, %181 : vector<8x32xf32>
    %c0_68 = arith.constant 0 : index
    %c0_69 = arith.constant 0 : index
    %c0_70 = arith.constant 0 : index
    %183 = vector.load %arg13[%c0_68, %c0_69, %c0_70] : memref<1x32x256xf32, #tpu.memory_space<vmem>>, vector<1x32x256xf32>
    %184 = vector.shape_cast %183 : vector<1x32x256xf32> to vector<32x256xf32>
    %cst_71 = arith.constant dense<0.000000e+00> : vector<8x256xf32>
    %185 = tpu.matmul %182, %184, %cst_71 {dimension_numbers = #tpu.dot_dimension_numbers<[1], [0], [0], [1], [0, 0, 1, 1], [], []>} : vector<8x32xf32>, vector<32x256xf32>, vector<8x256xf32> -> vector<8x256xf32>
    %c0_72 = arith.constant 0 : index
    %c0_73 = arith.constant 0 : index
    %c0_74 = arith.constant 0 : index
    %186 = vector.load %arg14[%c0_72, %c0_73, %c0_74] : memref<1x1x256xf32, #tpu.memory_space<vmem>>, vector<1x1x256xf32>
    %187 = vector.shape_cast %186 : vector<1x1x256xf32> to vector<1x256xf32>
    %188 = vector.broadcast %187 : vector<1x256xf32> to vector<8x256xf32>
    %189 = arith.addf %185, %188 : vector<8x256xf32>
    %190 = vector.extract_strided_slice %189 {offsets = [0, 0], sizes = [8, 128], strides = [1, 1]} : vector<8x256xf32> to vector<8x128xf32>
    %191 = vector.extract_strided_slice %189 {offsets = [0, 128], sizes = [8, 128], strides = [1, 1]} : vector<8x256xf32> to vector<8x128xf32>
    %cst_75 = arith.constant 0.000000e+00 : f32
    %192 = vector.broadcast %cst_75 : f32 to vector<8x128xf32>
    %193 = arith.subf %192, %190 : vector<8x128xf32>
    %194 = math.exp %193 : vector<8x128xf32>
    %cst_76 = arith.constant 1.000000e+00 : f32
    %195 = vector.broadcast %cst_76 : f32 to vector<8x128xf32>
    %196 = arith.addf %195, %194 : vector<8x128xf32>
    %cst_77 = arith.constant 1.000000e+00 : f32
    %197 = vector.broadcast %cst_77 : f32 to vector<8x128xf32>
    %198 = arith.divf %197, %196 : vector<8x128xf32>
    %199 = arith.mulf %190, %198 : vector<8x128xf32>
    %200 = arith.mulf %199, %191 : vector<8x128xf32>
    %c0_78 = arith.constant 0 : index
    %c0_79 = arith.constant 0 : index
    %c0_80 = arith.constant 0 : index
    %201 = vector.load %arg15[%c0_78, %c0_79, %c0_80] : memref<1x128x32xf32, #tpu.memory_space<vmem>>, vector<1x128x32xf32>
    %202 = vector.shape_cast %201 : vector<1x128x32xf32> to vector<128x32xf32>
    %cst_81 = arith.constant dense<0.000000e+00> : vector<8x32xf32>
    %203 = tpu.matmul %200, %202, %cst_81 {dimension_numbers = #tpu.dot_dimension_numbers<[1], [0], [0], [1], [0, 0, 1, 1], [], []>} : vector<8x128xf32>, vector<128x32xf32>, vector<8x32xf32> -> vector<8x32xf32>
    %c0_82 = arith.constant 0 : index
    %c0_83 = arith.constant 0 : index
    %c0_84 = arith.constant 0 : index
    %204 = vector.load %arg16[%c0_82, %c0_83, %c0_84] : memref<1x1x32xf32, #tpu.memory_space<vmem>>, vector<1x1x32xf32>
    %205 = vector.shape_cast %204 : vector<1x1x32xf32> to vector<1x32xf32>
    %206 = vector.broadcast %205 : vector<1x32xf32> to vector<8x32xf32>
    %207 = arith.addf %203, %206 : vector<8x32xf32>
    %208 = arith.addf %158, %207 : vector<8x32xf32>
    %c0_85 = arith.constant 0 : index
    %c0_86 = arith.constant 0 : index
    %209 = vector.load %arg21[%c0_85, %c0_86] : memref<8x32xf32, #tpu.memory_space<vmem>>, vector<8x32xf32>
    tpu.vector_store %arg21[%c0_85, %c0_86], %208 {strides = array<i32>} : memref<8x32xf32, #tpu.memory_space<vmem>>, vector<8x32xf32>,
    %c1_i32 = arith.constant 1 : i32
    %210 = arith.cmpi eq, %arg1, %c1_i32 : i32
    %211 = arith.extui %210 : i1 to i32
    %c0_i32_87 = arith.constant 0 : i32
    %212 = arith.cmpi ne, %211, %c0_i32_87 : i32
    scf.if %212 {
      %c0_88 = arith.constant 0 : index
      %c0_89 = arith.constant 0 : index
      %213 = vector.load %arg17[%c0_88, %c0_89] : memref<1x32xf32, #tpu.memory_space<vmem>>, vector<1x32xf32>
      %c0_90 = arith.constant 0 : index
      %c0_91 = arith.constant 0 : index
      %214 = vector.load %arg18[%c0_90, %c0_91] : memref<1x32xf32, #tpu.memory_space<vmem>>, vector<1x32xf32>
      %cst_92 = arith.constant dense<0.000000e+00> : vector<8xf32>
      %215 = vector.multi_reduction <add>, %208, %cst_92 [1] : vector<8x32xf32> to vector<8xf32>
      %216 = vector.shape_cast %215 : vector<8xf32> to vector<8x1xf32>
      %cst_93 = arith.constant 3.200000e+01 : f32
      %217 = vector.broadcast %cst_93 : f32 to vector<8x1xf32>
      %218 = arith.divf %216, %217 : vector<8x1xf32>
      %219 = vector.broadcast %218 : vector<8x1xf32> to vector<8x32xf32>
      %220 = arith.subf %208, %219 : vector<8x32xf32>
      %221 = arith.mulf %220, %220 : vector<8x32xf32>
      %cst_94 = arith.constant dense<0.000000e+00> : vector<8xf32>
      %222 = vector.multi_reduction <add>, %221, %cst_94 [1] : vector<8x32xf32> to vector<8xf32>
      %223 = vector.shape_cast %222 : vector<8xf32> to vector<8x1xf32>
      %cst_95 = arith.constant 3.200000e+01 : f32
      %224 = vector.broadcast %cst_95 : f32 to vector<8x1xf32>
      %225 = arith.divf %223, %224 : vector<8x1xf32>
      %cst_96 = arith.constant 9.99999974E-6 : f32
      %226 = vector.broadcast %cst_96 : f32 to vector<8x1xf32>
      %227 = arith.addf %225, %226 : vector<8x1xf32>
      %228 = math.rsqrt %227 : vector<8x1xf32>
      %229 = vector.broadcast %228 : vector<8x1xf32> to vector<8x32xf32>
      %230 = arith.mulf %220, %229 : vector<8x32xf32>
      %231 = vector.broadcast %213 : vector<1x32xf32> to vector<8x32xf32>
      %232 = arith.mulf %230, %231 : vector<8x32xf32>
      %233 = vector.broadcast %214 : vector<1x32xf32> to vector<8x32xf32>
      %234 = arith.addf %232, %233 : vector<8x32xf32>
      %c0_97 = arith.constant 0 : index
      %c0_98 = arith.constant 0 : index
      %235 = vector.load %arg19[%c0_97, %c0_98] : memref<32x64xf32, #tpu.memory_space<vmem>>, vector<32x64xf32>
      %cst_99 = arith.constant dense<0.000000e+00> : vector<8x64xf32>
      %236 = tpu.matmul %234, %235, %cst_99 {dimension_numbers = #tpu.dot_dimension_numbers<[1], [0], [0], [1], [0, 0, 1, 1], [], []>} : vector<8x32xf32>, vector<32x64xf32>, vector<8x64xf32> -> vector<8x64xf32>
      %c0_100 = arith.constant 0 : index
      %c0_101 = arith.constant 0 : index
      %c0_102 = arith.constant 0 : index
      %237 = vector.load %arg20[%c0_100, %c0_101, %c0_102] : memref<1x8x64xf32, #tpu.memory_space<vmem>>, vector<1x8x64xf32>
      %238 = vector.shape_cast %237 : vector<1x8x64xf32> to vector<8x64xf32>
      %239 = vector.shape_cast %236 : vector<8x64xf32> to vector<1x8x64xf32>
      tpu.vector_store %arg20[%c0_100, %c0_101, %c0_102], %239 {strides = array<i32>} : memref<1x8x64xf32, #tpu.memory_space<vmem>>, vector<1x8x64xf32>,
    } else {
    }
    return
  }
  func.func @transform_0(%arg0: i32, %arg1: i32) -> (i32, i32, i32) {
    %c0_i32 = arith.constant 0 : i32
    %c0_i32_0 = arith.constant 0 : i32
    %c0_i32_1 = arith.constant 0 : i32
    return %arg0, %c0_i32, %c0_i32_0 : i32, i32, i32
  }
  func.func @transform_1(%arg0: i32, %arg1: i32) -> (i32, i32) {
    %c0_i32 = arith.constant 0 : i32
    %c0_i32_0 = arith.constant 0 : i32
    %c0_i32_1 = arith.constant 0 : i32
    return %c0_i32, %c0_i32_0 : i32, i32
  }
  func.func @transform_2(%arg0: i32, %arg1: i32) -> (i32, i32) {
    %c0_i32 = arith.constant 0 : i32
    %c0_i32_0 = arith.constant 0 : i32
    %c0_i32_1 = arith.constant 0 : i32
    return %c0_i32, %c0_i32_0 : i32, i32
  }
  func.func @transform_3(%arg0: i32, %arg1: i32) -> (i32, i32, i32) {
    %c0_i32 = arith.constant 0 : i32
    %c0_i32_0 = arith.constant 0 : i32
    %c0_i32_1 = arith.constant 0 : i32
    return %arg1, %c0_i32, %c0_i32_0 : i32, i32, i32
  }
  func.func @transform_4(%arg0: i32, %arg1: i32) -> (i32, i32, i32) {
    %c0_i32 = arith.constant 0 : i32
    %c0_i32_0 = arith.constant 0 : i32
    %c0_i32_1 = arith.constant 0 : i32
    return %arg1, %c0_i32, %c0_i32_0 : i32, i32, i32
  }
  func.func @transform_5(%arg0: i32, %arg1: i32) -> (i32, i32, i32) {
    %c0_i32 = arith.constant 0 : i32
    %c0_i32_0 = arith.constant 0 : i32
    %c0_i32_1 = arith.constant 0 : i32
    return %arg1, %c0_i32, %c0_i32_0 : i32, i32, i32
  }
  func.func @transform_6(%arg0: i32, %arg1: i32) -> (i32, i32, i32) {
    %c0_i32 = arith.constant 0 : i32
    %c0_i32_0 = arith.constant 0 : i32
    %c0_i32_1 = arith.constant 0 : i32
    return %arg1, %c0_i32, %c0_i32_0 : i32, i32, i32
  }
  func.func @transform_7(%arg0: i32, %arg1: i32) -> (i32, i32, i32) {
    %c0_i32 = arith.constant 0 : i32
    %c0_i32_0 = arith.constant 0 : i32
    %c0_i32_1 = arith.constant 0 : i32
    return %arg1, %c0_i32, %c0_i32_0 : i32, i32, i32
  }
  func.func @transform_8(%arg0: i32, %arg1: i32) -> (i32, i32, i32) {
    %c0_i32 = arith.constant 0 : i32
    %c0_i32_0 = arith.constant 0 : i32
    %c0_i32_1 = arith.constant 0 : i32
    return %arg1, %c0_i32, %c0_i32_0 : i32, i32, i32
  }
  func.func @transform_9(%arg0: i32, %arg1: i32) -> (i32, i32, i32) {
    %c0_i32 = arith.constant 0 : i32
    %c0_i32_0 = arith.constant 0 : i32
    %c0_i32_1 = arith.constant 0 : i32
    return %arg1, %c0_i32, %c0_i32_0 : i32, i32, i32
  }
  func.func @transform_10(%arg0: i32, %arg1: i32) -> (i32, i32, i32) {
    %c0_i32 = arith.constant 0 : i32
    %c0_i32_0 = arith.constant 0 : i32
    %c0_i32_1 = arith.constant 0 : i32
    return %arg1, %c0_i32, %c0_i32_0 : i32, i32, i32
  }
  func.func @transform_11(%arg0: i32, %arg1: i32) -> (i32, i32, i32) {
    %c0_i32 = arith.constant 0 : i32
    %c0_i32_0 = arith.constant 0 : i32
    %c0_i32_1 = arith.constant 0 : i32
    return %arg1, %c0_i32, %c0_i32_0 : i32, i32, i32
  }
  func.func @transform_12(%arg0: i32, %arg1: i32) -> (i32, i32, i32) {
    %c0_i32 = arith.constant 0 : i32
    %c0_i32_0 = arith.constant 0 : i32
    %c0_i32_1 = arith.constant 0 : i32
    return %arg1, %c0_i32, %c0_i32_0 : i32, i32, i32
  }
  func.func @transform_13(%arg0: i32, %arg1: i32) -> (i32, i32, i32) {
    %c0_i32 = arith.constant 0 : i32
    %c0_i32_0 = arith.constant 0 : i32
    %c0_i32_1 = arith.constant 0 : i32
    return %arg1, %c0_i32, %c0_i32_0 : i32, i32, i32
  }
  func.func @transform_14(%arg0: i32, %arg1: i32) -> (i32, i32, i32) {
    %c0_i32 = arith.constant 0 : i32
    %c0_i32_0 = arith.constant 0 : i32
    %c0_i32_1 = arith.constant 0 : i32
    return %arg1, %c0_i32, %c0_i32_0 : i32, i32, i32
  }
  func.func @transform_15(%arg0: i32, %arg1: i32) -> (i32, i32) {
    %c0_i32 = arith.constant 0 : i32
    %c0_i32_0 = arith.constant 0 : i32
    %c0_i32_1 = arith.constant 0 : i32
    return %c0_i32, %c0_i32_0 : i32, i32
  }
  func.func @transform_16(%arg0: i32, %arg1: i32) -> (i32, i32) {
    %c0_i32 = arith.constant 0 : i32
    %c0_i32_0 = arith.constant 0 : i32
    %c0_i32_1 = arith.constant 0 : i32
    return %c0_i32, %c0_i32_0 : i32, i32
  }
  func.func @transform_17(%arg0: i32, %arg1: i32) -> (i32, i32) {
    %c0_i32 = arith.constant 0 : i32
    %c0_i32_0 = arith.constant 0 : i32
    %c0_i32_1 = arith.constant 0 : i32
    return %c0_i32, %c0_i32_0 : i32, i32
  }
  func.func @transform_18(%arg0: i32, %arg1: i32) -> (i32, i32, i32) {
    %c0_i32 = arith.constant 0 : i32
    %c0_i32_0 = arith.constant 0 : i32
    %c0_i32_1 = arith.constant 0 : i32
    return %arg0, %c0_i32, %c0_i32_0 : i32, i32, i32
  }
}

</mosaic_0001>

<bundles_post_ra>
// kernel: tpu_custom_call.1
= control target key start
LH: loop header
LB: loop body
LE: loop exit
PB: predicated region body
PF: predicated region fallthrough
CT: control target
= control target key end

     0   :  { %s3920_s0 = inlined_call_operand.vmem [shape: f32[2,8,32], index: 0, kind: input, shape index: {}]   ;;  %s3921_s1 = inlined_call_operand.vmem [shape: f32[8,16], index: 1, kind: input, shape index: {}]   ;;  %s3922_s2 = inlined_call_operand.vmem [shape: f32[8,16], index: 2, kind: input, shape index: {}]   ;;  %s3923_s3 = inlined_call_operand.vmem [shape: f32[2,1,32], index: 3, kind: input, shape index: {}]   ;;  %s3924_s4 = inlined_call_operand.vmem [shape: f32[2,1,32], index: 4, kind: input, shape index: {}]   ;;  %s3925_s5 = inlined_call_operand.vmem [shape: f32[2,32,96], index: 5, kind: input, shape index: {}]   ;;  %s3926_s6 = inlined_call_operand.vmem [shape: f32[2,1,96], index: 6, kind: input, shape index: {}]   ;;  %s3927_s7 = inlined_call_operand.vmem [shape: f32[2,32,32], index: 7, kind: input, shape index: {}]   ;;  %s3928_s8 = inlined_call_operand.vmem [shape: f32[2,1,32], index: 8, kind: input, shape index: {}]   ;;  %s3929_s9 = inlined_call_operand.vmem [shape: f32[2,1,32], index: 9, kind: input, shape index: {}]   ;;  %s3930_s10 = inlined_call_operand.vmem [shape: f32[2,1,32], index: 10, kind: input, shape index: {}]   ;;  %s3931_s11 = inlined_call_operand.vmem [shape: f32[2,32,256], index: 11, kind: input, shape index: {}]   ;;  %s3932_s12 = inlined_call_operand.vmem [shape: f32[2,1,256], index: 12, kind: input, shape index: {}]   ;;  %s3933_s13 = inlined_call_operand.vmem [shape: f32[2,128,32], index: 13, kind: input, shape index: {}]   ;;  %s3934_s14 = inlined_call_operand.vmem [shape: f32[2,1,32], index: 14, kind: input, shape index: {}]   ;;  %s3935_s15 = inlined_call_operand.vmem [shape: f32[1,32], index: 15, kind: input, shape index: {}]   ;;  %s3936_s16 = inlined_call_operand.vmem [shape: f32[1,32], index: 16, kind: input, shape index: {}]   ;;  %s3937_s17 = inlined_call_operand.vmem [shape: f32[32,64], index: 17, kind: input, shape index: {}]   ;;  %s3938_s18 = inlined_call_operand.hbm [shape: f32[2,8,64], index: 18, kind: output, shape index: {}]  }
   0x1   :  { %3955 = sst [smem:[#allocation19_spill]] %s3920_s0 }
   0x2   :  { %3956 = sst [smem:[#allocation20_spill]] %s3921_s1 }
   0x3   :  { %3957 = sst [smem:[#allocation21_spill]] %s3922_s2 }
   0x4   :  { %3958 = sst [smem:[#allocation22_spill]] %s3924_s4 }
   0x5   :  { %3959 = sst [smem:[#allocation23_spill]] %s3925_s5 }
   0x6   :  { %3960 = sst [smem:[#allocation24_spill]] %s3927_s7 }
   0x7   :  { %3961 = sst [smem:[#allocation25_spill]] %s3935_s15 }
   0x8   :  { %3962 = sst [smem:[#allocation26_spill]] %s3936_s16 }
   0x9   :  { %3963 = sst [smem:[#allocation27_spill]] %s3937_s17 }
   0xa   :  { %3964 = sst [smem:[#allocation28_spill]] %s3938_s18 }
   0xb   :  { %23 = vsyncpa [#allocation4], 0 }
   0xc   :  { %25 = vsyncpa [#allocation4 + $0x1], 0  ;;  %s3443_s27 = smov 0   ;;  %s3445_s28 = smov 0  }
   0xd   :  { %s3447_s29 = smov 0   ;;  %s3449_s30 = smov 0  }
   0xe   :  { %s3451_s0 = smov 0   ;;  %s3453_s19 = smov 0  }
   0xf   :  { %s3455_s1 = smov 0   ;;  %s3457_s20 = smov 0  }
  0x10 LB: > { %3965 = sst [smem:[#allocation6_spill]] %s3290_s27  ;;  %s2790_s21 = sadd.s32 4294967295, %s3318_s20   ;;  %s3318_s20 = sphi %s3457_s20, %s31_s20   ;;  %s3314_s1 = sphi %s3455_s1, %s4012_s1   ;;  %s3310_s19 = sphi %s3453_s19, %s4011_s19   ;;  %s3306_s0 = sphi %s3451_s0, %s4010_s0   ;;  %s3302_s30 = sphi %s3449_s30, %s4009_s30   ;;  %s3298_s29 = sphi %s3447_s29, %s4008_s29   ;;  %s3294_s28 = sphi %s3445_s28, %s4007_s28   ;;  %s3290_s27 = sphi %s3443_s27, %s4006_s27  }
  0x11   : > { %3966 = sst [smem:[#allocation7_spill]] %s3294_s28  ;;  %s2791_s22 = sadd.s32 4294967294, %s3318_s20  }
  0x12   : > { %3967 = sst [smem:[#allocation8_spill]] %s3298_s29  ;;  %s40_s2 = sadd.s32 1, %s3310_s19 }
  0x13   : > { %3968 = sst [smem:[#allocation9_spill]] %s3302_s30  ;;  %p41_p0 = scmp.ge.s32.totalorder %s40_s2, 2 }
  0x14   : > { %3969 = sst [smem:[#allocation10_spill]] %s3306_s0  ;;  %s43_s23 = sadd.s32 1, %s3314_s1 }
  0x15   : > { %3970 = sst [smem:[#allocation11_spill]] %s3310_s19  ;;  %p503_p1 = scmp.ne.s32.totalorder %s3298_s29, %s3294_s28 }
  0x16   : > { %3971 = sst [smem:[#allocation12_spill]] %s3314_s1  ;;  %p504_p2 = scmp.eq.s32.totalorder %s2790_s21, 3 }
  0x17   : > { %3972 = sst [smem:[#allocation13_spill]] %s3318_s20  ;;  %s4014_s2 = smov (%p41_p0, %s40_s2), 0 }
  0x18   : > { %3973 = sst [smem:[#allocation14_spill]] %s4014_s2  ;;  %s4016_s23 = smov (!%p41_p0, %s43_s23), %s3314_s1 }
  0x19   : > { %p3492_p3 = por %p504_p2, %p503_p1  ;;  %p509_p4 = scmp.ne.s32.totalorder %s3294_s28, %s3290_s27 }
  0x1a   : > { %p45_p5 = scmp.ge.s32.totalorder %s4016_s23, 2  ;;  %p510_p6 = scmp.eq.s32.totalorder %s2791_s22, 3 }
  0x1b   : > { %s3974_s24 = scalar_select %p3492_p3, 1, 0 }
  0x1c   : > { %p2794_p7 = scmp.ge.s32.totalorder %s3318_s20, 1  ;;  %p631_p8 = scmp.lt.s32.totalorder %s3318_s20, 5 }
  0x1d   : > { %3975 = sst [smem:[#allocation15_spill]] %s3974_s24  ;;  %s4018_s23 = smov (%p45_p5, %s4016_s23), 0 }
  0x1e   : > { %3976 = sst [smem:[#allocation16_spill]] %s4018_s23  ;;  %p3502_p9 = por %p510_p6, %p509_p4 }
  0x1f   : > { %p632_p10 = pnand %p2794_p7, %p631_p8  ;;  %s490_s26 = ssub.s32 %s3314_s1, %s4018_s23 }
  0x20   : > { %s3977_s25 = scalar_select %p3502_p9, 1, 0 }
  0x21   : > { %s493_s21 = sadd.s32 1, %s3298_s29  ;;  %p491_p11 = scmp.eq.s32.totalorder %s490_s26, 0 }
  0x22   : > { %3978 = sst [smem:[#allocation17_spill]] %s3977_s25  ;;  %635 = sbr.rel (%p632_p10) target bundleno = 4398 (0x112e), region = 92 }
  0x23   : > { %s3510_s2 = scalar_select %p491_p11, %s3298_s29, %s493_s21  }
  0x24   : > { %s3944_s22 = sand.u32 (!%p632_p10), 1, %s3294_s28   ;;  %p729_p12 = scmp.lt.s32.totalorder (!%p632_p10), %s3306_s0, 1 }
  0x25   : > { %3979 = sst [smem:[#allocation18_spill]] %s3510_s2  ;;  %s3516_s19 = sshll.u32 (!%p632_p10), %s3944_s22, 3 }
  0x26   : > { %p733_p13 = scmp.lt.s32.totalorder (!%p632_p10), %s3302_s30, 1  ;;  %s3980_s1 = sld [smem:[#allocation19_spill]] (!%p632_p10) }
  0x27   : > { %s3982_s5 = sld [smem:[#allocation23_spill]] (!%p632_p10)  ;;  %s3983_s7 = sld [smem:[#allocation24_spill]] (!%p632_p10) }
  0x29   : > { %s730_s25 = scalar_select %p729_p12, %s3306_s0, 1 }
  0x2a   : > { %s3521_s27 = scalar_select %p733_p13, %s3302_s30, 1 }
  0x2b   : > { %s2796_s26 = sshll.u32 %s730_s25, 3 }
  0x2c   : > { %s732_s22 = scalar_lea.vmem %s3980_s1, %s2796_s26  ;;  %s2848_s0 = sshll.u32 %s3521_s27, 5 }
  0x2d   : > { %s3538_s17 = scalar_lea.vmem %s3982_s5, %s2848_s0  ;;  %s3547_s29 = scalar_lea.vmem %s3983_s7, %s2848_s0 }
  0x2e   : > { %s2850_s4 = sshll.u32 %s3521_s27, 6  ;;  %s2803_s30 = sshll.u32 %s3521_s27, 1 }
  0x2f   : > { %s3566_s1 = scalar_lea.vmem %s3931_s11, %s2850_s4  ;;  %s3571_s2 = scalar_lea.vmem %s3932_s12, %s2803_s30 }
  0x30   : > { %s2851_s21 = sshll.u32 %s3521_s27, 7  ;;  %s777_s24 = scalar_lea.vmem %s3934_s14, %s3521_s27 }
  0x31   : > { %s3581_s16 = scalar_lea.vmem %s3933_s13, %s2851_s21  ;;  %s728_s5 = scalar_lea.vmem [#allocation3], %s3516_s19 }
  0x32   : > { %s3984_s7 = sld [smem:[#allocation9_spill]] }
  0x38   : > { %p2806_p0 = scmp.ne.s32.totalorder %s3984_s7, 0 }
  0x39   : > { %v782_v0 = vld [vmem:[%s732_s22] sm:$0xff] (!%p2806_p0)  ;;  %vm783_vm0 = vcmask (!%p2806_p0), 261120  }
  0x3a   : > { %781 = sbr.rel (%p2806_p0) target bundleno = 65 (0x41), region = 96  ;;  %784 = vst.msk [vmem:[#allocation2] sm:$0xff] (!%p2806_p0), %vm783_vm0, %v782_v0 }
  0x41 PF: > { %v3585_v1 = vld [vmem:[#allocation2] sm:$0xff]  ;;  %vm788_vm1 = vcmask 261120   ;;  %v818_v9 = vld [vmem:[%s3538_s17 + $0x8] sm:$0xff]  ;;  %v819_v10 = vld [vmem:[%s3538_s17 + $0x10] sm:$0xff]  ;;  %v3320_v11 = vmov 0.0|0.0   ;;  %vm3321_vm2 = vmmov 0   ;;  %s3987_s21 = scalar_lea.vmem %s3923_s3, %s3521_s27  ;;  %s3990_s22 = scalar_lea.vmem %s3926_s6, %s3521_s27  ;;  %v951_v56 = vlaneseq }
  0x42   : > { %v789_v2 = vsel %vm788_vm1, %v3585_v1, 0.0  ;;  %v817_v8 = vld [vmem:[%s3538_s17] sm:$0xff]  ;;  %3048 = vmatprep.subr.bf16.mxu0 %v3320_v11  ;;  %v820_v13 = vld [vmem:[%s3538_s17 + $0x18] sm:$0xff]  ;;  %v3322_v14 = vmov 0.0   ;;  %s3985_s17 = sld [smem:[#allocation21_spill]]  ;;  %s3986_s23 = sld [smem:[#allocation20_spill]] }
  0x43   : > { %790 = vadd.xlane.f32.xlu0 %v789_v2  ;;  %v3049_v12 = vpack.c.bf16 %v818_v9, %v817_v8  ;;  %2919 = vmatprep.mubr.msk.f32.mxu0 %vm3321_vm2, %v3322_v14  ;;  %v3052_v15 = vpack.c.bf16 %v820_v13, %v819_v10  ;;  %s3323_s18 = smov 32   ;;  %s3324_s30 = smov 48   ;;  %v2807_v22 = vld [vmem:[%s3987_s21] ss:$0 sm:$0xff]  ;;  %vm967_vm3 = vcmask 31744   ;;  %v3667_v57 = vshrl.u32 %v951_v56, 7 }
  0x44   : > { %2952 = vmatprep.subr.mxu1 %v3322_v14  ;;  %2954 = vmatprep.mubr.msk.f32.mxu1 %vm3321_vm2, %v3322_v14  ;;  %s3325_s25 = smov 16   ;;  %s3988_s4 = sld [smem:[#allocation22_spill]]  ;;  %v2809_v27 = vld [vmem:[%s3990_s22] ss:$0 sm:$0xff]  ;;  %v3669_v58 = vand.u32 127, %v951_v56  ;;  %vm1121_vm5 = vcmask 64512  }
  0x45   : > { %3050 = vmatpush3.bf16.msra.mxu0 %v3049_v12  ;;  %s3329_s0 = smov 64   ;;  %s3330_s26 = smov 108   ;;  %v956_v9 = vld [vmem:[%s3547_s29] sm:$0xff] }
  0x46   : > { %3051 = vmatprep.subr.bf16.mxu0 %v3320_v11  ;;  %vm955_vm4 = vcmp.gt.s32.totalorder %v3669_v58, %v3667_v57  ;;  %s3331_s21 = smov 124   ;;  %s3332_s28 = smov 104   ;;  %v958_v58 = vld [vmem:[%s3547_s29 + $0x10] sm:$0xff] }
  0x47   : > { %s3333_s15 = smov 120   ;;  %s3337_s20 = smov 88  }
  0x48   : > { %v902_v16 = vld [vmem:[%s3985_s17] sm:$0xff]  ;;  %s3336_s17 = smov 72   ;;  %s3338_s22 = smov 68  }
  0x49   : > { %3053 = vmatpush3.bf16.msra.mxu0 %v3052_v15  ;;  %v3609_v17 = vld [vmem:[%s3986_s23] sm:$0xff]  ;;  %942 = vrot.lane.b32.xlu1 %v902_v16, %s3323_s18  ;;  %s3326_s23 = smov 112  }
  0x4a   : > { %2922 = vmatprep.subr.mxu0 %v3322_v14  ;;  %s3989_s7 = scalar_lea.vmem %s3988_s4, %s3521_s27  ;;  %s3334_s4 = smov 76  }
  0x4b   : > { %v2808_v24 = vld [vmem:[%s3989_s7] ss:$0 sm:$0xff]  ;;  %s3335_s7 = smov 92  }
  0x4d   : > { %929 = vrot.lane.b32.xlu1 %v902_v16, %s3324_s30 }
  0x51   : > { %915 = vrot.lane.b32.xlu1 %v3609_v17, %s3325_s25 }
  0x55   : > { %925 = vrot.lane.b32.xlu1 %v3609_v17, %s3323_s18  ;;  %s3327_s18 = smov 80  }
  0xbb   : > { %v943_v31 = vpop.permute.xlu1 %942 }
  0xbf   : > { %v930_v34 = vpop.permute.xlu1 %929 }
  0xc3   : > { %v916_v36 = vpop.permute.xlu1 %915 }
  0xc7   : > { %v926_v37 = vpop.permute.xlu1 %925 }
  0xd0   : > { %v791_v3 = vpop.xlane.xlu0 %790 }
  0xd1   : > { %v793_v4 = vmul.f32 0.03125, %v791_v3 }
  0xd3   : > { %v794_v5 = vsub.f32 %v3585_v1, %v793_v4 }
  0xd5   : > { %v795_v6 = vmul.f32 %v794_v5, %v794_v5 }
  0xd7   : > { %v796_v7 = vsel %vm788_vm1, %v795_v6, 0.0 }
  0xd8   : > { %797 = vadd.xlane.f32.xlu0 %v796_v7 }
  0xee   : > { %938 = vrot.lane.b32.xlu0 %v3609_v17, %s3324_s30 }
 0x165   : > { %v798_v18 = vpop.xlane.xlu0 %797 }
 0x166   : > { %v799_v19 = vmul.f32 0.03125, %v798_v18 }
 0x168   : > { %v800_v20 = vadd.f32 1e-05, %v799_v19 }
 0x169   : > { %v939_v38 = vpop.permute.xlu0 %938 }
 0x16a   : > { %3198 = vrsqrt.f32 %v800_v20 }
 0x174   : > { %v3199_v21 = vpop.eup %3198 }
 0x175   : > { %v802_v23 = vmul.f32 %v3199_v21, %v794_v5 }
 0x177   : > { %v809_v25 = vmul.f32 %v2807_v22, %v802_v23 }
 0x179   : > { %v816_v26 = vadd.f32 %v2808_v24, %v809_v25 }
 0x17b   : > { %2920 = vmatmul.mubr.msk.f32.vlgmr.msra.gmra.mrb[0].mxu0 %vm788_vm1, %v816_v26 }
 0x17c   : > { %2924 = vmatprep.mubr.msk.f32.mxu0 %vm3321_vm2, %v3322_v14 }
 0x24e   : > { %v897_v28 = vpop.f32.mrb[0].mxu0 }
 0x24f   : > { %v3634_v29 = vadd.f32 %v2809_v27, %v897_v28  ;;  %v2921_v30 = vpop.f32.mrb[1].mxu0 }
 0x251   : > { %v945_v32 = vmul.f32 %v943_v31, %v3634_v29  ;;  %v919_v33 = vmul.f32 %v902_v16, %v3634_v29  ;;  %v932_v35 = vmul.f32 %v930_v34, %v3634_v29  ;;  %v941_v39 = vmul.f32 %v939_v38, %v3634_v29 }
 0x252   : > { %v918_v42 = vmul.f32 %v916_v36, %v3634_v29  ;;  %v928_v45 = vmul.f32 %v926_v37, %v3634_v29  ;;  %v903_v53 = vmul.f32 %v3609_v17, %v3634_v29 }
 0x253   : > { %947 = vrot.lane.b32.xlu1 %v945_v32, %s3325_s25 }
 0x257   : > { %921 = vrot.lane.b32.xlu1 %v919_v33, %s3325_s25 }
 0x25b   : > { %934 = vrot.lane.b32.xlu1 %v932_v35, %s3326_s23 }
 0x25f   : > { %905 = vrot.lane.b32.xlu1 %v902_v16, %s3325_s25  ;;  %s3328_s25 = smov 96  }
 0x2c5   : > { %v948_v40 = vpop.permute.xlu1 %947 }
 0x2c6   : > { %v3640_v41 = vadd.f32 %v948_v40, %v941_v39 }
 0x2c8   : > { %965 = vrot.lane.b32.xlu0 %v3640_v41, %s3327_s18  ;;  %s3340_s18 = smov 116  }
 0x2c9   : > { %v922_v43 = vpop.permute.xlu1 %921 }
 0x2ca   : > { %v3644_v44 = vadd.f32 %v922_v43, %v918_v42 }
 0x2cc   : > { %962 = vrot.lane.b32.xlu1 %v3644_v44, %s3326_s23 }
 0x2cd   : > { %v935_v46 = vpop.permute.xlu1 %934 }
 0x2ce   : > { %v3648_v47 = vsub.f32 %v928_v45, %v935_v46 }
 0x2d0   : > { %1043 = vrot.lane.b32.xlu0 %v3648_v47, %s3328_s25  ;;  %s3341_s25 = smov 56  }
 0x2d1   : > { %v906_v48 = vpop.permute.xlu1 %905 }
 0x2d2   : > { %v908_v49 = vmul.f32 %v906_v48, %v3634_v29 }
 0x2d4   : > { %910 = vrot.lane.b32.xlu1 %v908_v49, %s3326_s23  ;;  %s3339_s23 = smov 100  }
 0x33a   : > { %v966_v50 = vpop.permute.xlu0 %965 }
 0x33b   : > { %2923 = vmatpush3.xpose.msk.msra.mxu0 %vm967_vm3, %v966_v50 }
 0x33c   : > { %2927 = vmatprep.subr.mxu0 %v3322_v14 }
 0x33e   : > { %v963_v51 = vpop.permute.xlu1 %962 }
 0x33f   : > { %2925 = vmatmul.mubr.msk.f32.vlgmr.msra.gmra.mrb[2].mxu0 %vm967_vm3, %v963_v51  ;;  %v957_v51 = vld [vmem:[%s3547_s29 + $0x8] sm:$0xff] }
 0x340   : > { %2929 = vmatprep.mubr.msk.f32.mxu0 %vm3321_vm2, %v3322_v14 }
 0x342   : > { %v1044_v52 = vpop.permute.xlu0 %1043 }
 0x343   : > { %2928 = vmatpush3.xpose.msk.msra.mxu0 %vm967_vm3, %v1044_v52 }
 0x344   : > { %2932 = vmatprep.subr.mxu0 %v3322_v14 }
 0x346   : > { %v911_v54 = vpop.permute.xlu1 %910 }
 0x347   : > { %v3661_v55 = vsub.f32 %v903_v53, %v911_v54 }
 0x349   : > { %2930 = vmatmul.mubr.msk.f32.vlgmr.msra.gmra.mrb[2].mxu0 %vm967_vm3, %v3661_v55 }
 0x34a   : > { %2934 = vmatprep.mubr.msk.f32.mxu0 %vm3321_vm2, %v3322_v14 }
 0x41c   : > { %v1116_v59 = vpop.f32.mrb[2].mxu0 }
 0x41d   : > { %v1120_v60 = vsel %vm955_vm4, -inf, %v1116_v59  ;;  %v2931_v61 = vpop.f32.mrb[3].mxu0 }
 0x41e   : > { %v1122_v62 = vsel %vm1121_vm5, %v1120_v60, -inf }
 0x41f   : > { %1123 = vmax.xlane.f32.xlu0 %v1122_v62 }
 0x435   : > { %1134 = vrot.lane.b32.xlu0 %v3634_v29, %s3329_s0  ;;  %s3342_s0 = smov 84  }
 0x439   : > { %1290 = vrot.lane.b32.xlu0 %v3644_v44, %s3330_s26 }
 0x43d   : > { %1368 = vrot.lane.b32.xlu0 %v3661_v55, %s3331_s21 }
 0x441   : > { %1608 = vrot.lane.b32.xlu0 %v3644_v44, %s3332_s28  ;;  %s3991_s28 = scalar_lea.vmem %s3928_s8, %s3521_s27 }
 0x445   : > { %1686 = vrot.lane.b32.xlu0 %v3661_v55, %s3333_s15 }
 0x4ac   : > { %v1124_v63 = vpop.xlane.xlu0 %1123 }
 0x4ad   : > { %v1125_v0 = vsub.f32 %v1120_v60, %v1124_v63 }
 0x4af   : > { %v1126_v2 = vmul.f32 1.442695, %v1125_v0 }
 0x4b0   : > { %v1135_v3 = vpop.permute.xlu0 %1134 }
 0x4b1   : > { %3200 = vpow2.f32 %v1126_v2  ;;  %2933 = vmatpush3.msra.mxu0 %v1135_v3 }
 0x4b2   : > { %2937 = vmatprep.subr.mxu0 %v3322_v14 }
 0x4b4   : > { %v1291_v15 = vpop.permute.xlu0 %1290 }
 0x4b8   : > { %v1369_v17 = vpop.permute.xlu0 %1368 }
 0x4bb   : > { %v3201_v4 = vpop.eup %3200 }
 0x4bc   : > { %v1128_v5 = vsel %vm1121_vm5, %v3201_v4, 0.0  ;;  %v1609_v19 = vpop.permute.xlu0 %1608 }
 0x4bd   : > { %1129 = vadd.xlane.f32.xlu1 %v1128_v5 }
 0x4c0   : > { %v1687_v21 = vpop.permute.xlu0 %1686 }
 0x4ce   : > { %1292 = vrot.lane.b32.xlu1 %v3640_v41, %s3334_s4  ;;  %s3992_s4 = scalar_lea.vmem %s3929_s9, %s3521_s27 }
 0x4d2   : > { %1370 = vrot.lane.b32.xlu1 %v3648_v47, %s3335_s7 }
 0x4d6   : > { %1610 = vrot.lane.b32.xlu1 %v3640_v41, %s3336_s17  ;;  %s3993_s17 = scalar_lea.vmem %s3930_s10, %s3521_s27 }
 0x4da   : > { %1688 = vrot.lane.b32.xlu1 %v3648_v47, %s3337_s20  ;;  %s3994_s20 = sld [smem:[#allocation9_spill]] }
 0x4e0   : > { %p2840_p1 = scmp.ne.s32.totalorder %s3994_s20, 1 }
 0x4e1   : > { %vm3345_vm6 = vmmov (!%p2840_p1), 0   ;;  %s3997_s7 = sld [smem:[#allocation26_spill]] (!%p2840_p1)  ;;  %vm2581_vm7 = vcmask (!%p2840_p1), 523264  }
 0x54a   : > { %v1130_v6 = vpop.xlane.xlu1 %1129 }
 0x54b   : > { %3202 = vrcp.f32 %v1130_v6  ;;  %v2817_v6 = vld [vmem:[%s3991_s28] ss:$0 sm:$0xff] }
 0x54e   : > { %v1293_v10 = vpop.permute.xlu1 %1292 }
 0x552   : > { %v1371_v16 = vpop.permute.xlu1 %1370 }
 0x555   : > { %v3203_v7 = vpop.eup %3202 }
 0x556   : > { %v1132_v8 = vmul.f32 %v3203_v7, %v3201_v4  ;;  %v1611_v18 = vpop.permute.xlu1 %1610 }
 0x558   : > { %2935 = vmatmul.mubr.msk.f32.vlgmr.msra.gmra.mrb[4].mxu0 %vm1121_vm5, %v1132_v8 }
 0x559   : > { %2938 = vmatpush3.msra.mxu0 %v956_v9  ;;  %2939 = vmatprep.mubr.msk.f32.mxu0 %vm3321_vm2, %v3322_v14 }
 0x55a   : > { %2942 = vmatprep.subr.mxu0 %v3322_v14  ;;  %v1689_v20 = vpop.permute.xlu1 %1688 }
 0x62b   : > { %v1206_v12 = vpop.f32.mrb[4].mxu0 }
 0x62c   : > { %v2936_v13 = vpop.f32.mrb[5].mxu0  ;;  %2940 = vmatmul.mubr.msk.f32.vlgmr.msra.gmra.mrb[6].mxu0 %vm1121_vm5, %v1206_v12 }
 0x62d   : > { %2943 = vmatpush3.xpose.msk.msra.mxu0 %vm967_vm3, %v1293_v10  ;;  %2944 = vmatprep.mubr.msk.f32.mxu0 %vm3321_vm2, %v3322_v14 }
 0x62e   : > { %2947 = vmatprep.subr.mxu0 %v3322_v14 }
 0x630   : > { %2945 = vmatmul.mubr.msk.f32.vlgmr.msra.gmra.mrb[8].mxu0 %vm967_vm3, %v1291_v15 }
 0x631   : > { %2948 = vmatpush3.xpose.msk.msra.mxu0 %vm967_vm3, %v1371_v16  ;;  %2949 = vmatprep.mubr.msk.f32.mxu0 %vm3321_vm2, %v3322_v14 }
 0x632   : > { %2962 = vmatprep.subr.mxu0 %v3322_v14 }
 0x638   : > { %2950 = vmatmul.mubr.msk.f32.vlgmr.msra.gmra.mrb[8].mxu0 %vm967_vm3, %v1369_v17 }
 0x639   : > { %2963 = vmatpush3.xpose.msk.msra.mxu0 %vm967_vm3, %v1611_v18  ;;  %2964 = vmatprep.mubr.msk.f32.mxu0 %vm3321_vm2, %v3322_v14  ;;  %v959_v18 = vld [vmem:[%s3547_s29 + $0x18] sm:$0xff]  ;;  %s3996_s29 = sld [smem:[#allocation25_spill]] (!%p2840_p1) }
 0x63a   : > { %2967 = vmatprep.subr.mxu0 %v3322_v14 }
 0x63c   : > { %2965 = vmatmul.mubr.msk.f32.vlgmr.msra.gmra.mrb[10].mxu0 %vm967_vm3, %v1609_v19 }
 0x63d   : > { %2968 = vmatpush3.xpose.msk.msra.mxu0 %vm967_vm3, %v1689_v20  ;;  %2969 = vmatprep.mubr.msk.f32.mxu0 %vm3321_vm2, %v3322_v14 }
 0x63e   : > { %2982 = vmatprep.subr.mxu0 %v3322_v14 }
 0x644   : > { %2970 = vmatmul.mubr.msk.f32.vlgmr.msra.gmra.mrb[10].mxu0 %vm967_vm3, %v1687_v21 }
 0x645   : > { %2984 = vmatprep.mubr.msk.f32.mxu0 %vm3321_vm2, %v3322_v14 }
 0x6ff   : > { %v3716_v22 = vpop.f32.mrb[6].mxu0 }
 0x700   : > { %v2941_v23 = vpop.f32.mrb[7].mxu0  ;;  %v1289_v7 = vadd.f32 %v2817_v6, %v3716_v22 }
 0x70b   : > { %v1442_v24 = vpop.f32.mrb[8].mxu0 }
 0x70c   : > { %v1446_v25 = vsel %vm955_vm4, -inf, %v1442_v24  ;;  %v2951_v26 = vpop.f32.mrb[9].mxu0 }
 0x70d   : > { %v1447_v27 = vsel %vm1121_vm5, %v1446_v25, -inf }
 0x70e   : > { %1448 = vmax.xlane.f32.xlu1 %v1447_v27 }
 0x717   : > { %v1760_v28 = vpop.f32.mrb[10].mxu0 }
 0x718   : > { %v2971_v30 = vpop.f32.mrb[11].mxu0  ;;  %v1764_v38 = vsel %vm955_vm4, -inf, %v1760_v28 }
 0x719   : > { %v1765_v39 = vsel %vm1121_vm5, %v1764_v38, -inf }
 0x71f   : > { %1928 = vrot.lane.b32.xlu1 %v3640_v41, %s3338_s22  ;;  %s3995_s22 = sld [smem:[#allocation27_spill]] (!%p2840_p1) }
 0x723   : > { %1926 = vrot.lane.b32.xlu1 %v3644_v44, %s3339_s23 }
 0x727   : > { %2004 = vrot.lane.b32.xlu1 %v3661_v55, %s3340_s18 }
 0x79b   : > { %v1449_v31 = vpop.xlane.xlu1 %1448 }
 0x79c   : > { %v1450_v32 = vsub.f32 %v1446_v25, %v1449_v31 }
 0x79e   : > { %v1451_v33 = vmul.f32 1.442695, %v1450_v32 }
 0x79f   : > { %v1929_v34 = vpop.permute.xlu1 %1928 }
 0x7a0   : > { %3204 = vpow2.f32 %v1451_v33  ;;  %2983 = vmatpush3.xpose.msk.msra.mxu0 %vm967_vm3, %v1929_v34  ;;  %v2275_v34 = vld [vmem:[%s3566_s1 + $0x8] sm:$0xff] }
 0x7a1   : > { %2987 = vmatprep.subr.mxu0 %v3322_v14 }
 0x7a3   : > { %v1927_v35 = vpop.permute.xlu1 %1926 }
 0x7a4   : > { %2985 = vmatmul.mubr.msk.f32.vlgmr.msra.gmra.mrb[12].mxu0 %vm967_vm3, %v1927_v35  ;;  %v2277_v35 = vld [vmem:[%s3566_s1 + $0x18] sm:$0xff] }
 0x7a5   : > { %2989 = vmatprep.mubr.msk.f32.mxu0 %vm3321_vm2, %v3322_v14 }
 0x7a7   : > { %v2005_v44 = vpop.permute.xlu1 %2004 }
 0x7aa   : > { %v3205_v36 = vpop.eup %3204 }
 0x7ab   : > { %v1453_v37 = vsel %vm1121_vm5, %v3205_v36, 0.0 }
 0x7ac   : > { %1454 = vadd.xlane.f32.xlu0 %v1453_v37  ;;  %v2276_v37 = vld [vmem:[%s3566_s1 + $0x10] sm:$0xff] }
 0x7c2   : > { %1458 = vrot.lane.b32.xlu0 %v3634_v29, %s3341_s25 }
 0x7c6   : > { %2006 = vrot.lane.b32.xlu0 %v3648_v47, %s3342_s0 }
 0x7e5   : > { %1766 = vmax.xlane.f32.xlu0 %v1765_v39  ;;  %v2279_v39 = vld [vmem:[%s3566_s1 + $0x28] sm:$0xff] }
 0x7fb   : > { %1776 = vrot.lane.b32.xlu0 %v3634_v29, %s3324_s30  ;;  %s3343_s30 = smov 40  }
 0x839   : > { %v1455_v40 = vpop.xlane.xlu0 %1454 }
 0x83a   : > { %3206 = vrcp.f32 %v1455_v40  ;;  %v2281_v40 = vld [vmem:[%s3566_s1 + $0x38] sm:$0xff] }
 0x83d   : > { %v1459_v41 = vpop.permute.xlu0 %1458 }
 0x83e   : > { %2953 = vmatpush3.msra.mxu1 %v1459_v41  ;;  %v3058_v41 = vpack.c.bf16 %v2281_v40, %v2279_v39 }
 0x83f   : > { %2957 = vmatprep.subr.mxu1 %v3322_v14 }
 0x841   : > { %v2007_v42 = vpop.permute.xlu0 %2006 }
 0x842   : > { %2988 = vmatpush3.xpose.msk.msra.mxu0 %vm967_vm3, %v2007_v42  ;;  %v2278_v42 = vld [vmem:[%s3566_s1 + $0x20] sm:$0xff] }
 0x844   : > { %v3207_v43 = vpop.eup %3206 }
 0x845   : > { %2990 = vmatmul.mubr.msk.f32.vlgmr.msra.gmra.mrb[12].mxu0 %vm967_vm3, %v2005_v44  ;;  %v1457_v45 = vmul.f32 %v3207_v43, %v3205_v36  ;;  %v2274_v36 = vld [vmem:[%s3566_s1] sm:$0xff]  ;;  %v2280_v43 = vld [vmem:[%s3566_s1 + $0x30] sm:$0xff] }
 0x846   : > { %2361 = vmatprep.mubr.f32.mxu0 %v3322_v14  ;;  %v3060_v44 = vpack.c.bf16 %v2280_v43, %v2278_v42  ;;  %v2504_v42 = vld [vmem:[%s3995_s22] sm:$0xff] (!%p2840_p1)  ;;  %v2506_v43 = vld [vmem:[%s3995_s22 + $0x10] sm:$0xff] (!%p2840_p1) }
 0x847   : > { %2955 = vmatmul.mubr.msk.f32.vlgmr.msra.gmra.mrb[0].mxu1 %vm1121_vm5, %v1457_v45 }
 0x848   : > { %2959 = vmatprep.mubr.msk.f32.mxu1 %vm3321_vm2, %v3322_v14  ;;  %2958 = vmatpush3.msra.mxu1 %v957_v51  ;;  %v2837_v51 = vld [vmem:[%s3993_s17] ss:$0 sm:$0xff] }
 0x849   : > { %2972 = vmatprep.subr.mxu1 %v3322_v14 }
 0x872   : > { %v1767_v46 = vpop.xlane.xlu0 %1766 }
 0x873   : > { %v1768_v47 = vsub.f32 %v1764_v38, %v1767_v46  ;;  %v3056_v38 = vpack.c.bf16 %v2276_v37, %v2274_v36 }
 0x875   : > { %v1769_v48 = vmul.f32 1.442695, %v1768_v47 }
 0x876   : > { %v1777_v61 = vpop.permute.xlu0 %1776 }
 0x877   : > { %3208 = vpow2.f32 %v1769_v48 }
 0x881   : > { %v3209_v49 = vpop.eup %3208 }
 0x882   : > { %v1771_v50 = vsel %vm1121_vm5, %v3209_v49, 0.0 }
 0x883   : > { %1772 = vadd.xlane.f32.xlu1 %v1771_v50 }
 0x910   : > { %v1773_v52 = vpop.xlane.xlu1 %1772 }
 0x911   : > { %3210 = vrcp.f32 %v1773_v52 }
 0x918   : > { %v2078_v53 = vpop.f32.mrb[12].mxu0 }
 0x919   : > { %v2082_v54 = vsel %vm955_vm4, -inf, %v2078_v53  ;;  %v2991_v55 = vpop.f32.mrb[13].mxu0 }
 0x91a   : > { %v1530_v56 = vpop.f32.mrb[0].mxu1  ;;  %v2083_v59 = vsel %vm1121_vm5, %v2082_v54, -inf  ;;  %v2377_v55 = vld [vmem:[%s3581_s16 + $0x8] sm:$0xff] }
 0x91b   : > { %v3211_v60 = vpop.eup %3210  ;;  %v2956_v62 = vpop.f32.mrb[1].mxu1  ;;  %2960 = vmatmul.mubr.msk.f32.vlgmr.msra.gmra.mrb[2].mxu1 %vm1121_vm5, %v1530_v56  ;;  %2084 = vmax.xlane.f32.xlu1 %v2083_v59  ;;  %v2378_v59 = vld [vmem:[%s3581_s16 + $0x10] sm:$0xff] }
 0x91c   : > { %v1775_v63 = vmul.f32 %v3211_v60, %v3209_v49  ;;  %2973 = vmatpush3.msra.mxu1 %v1777_v61  ;;  %2974 = vmatprep.mubr.msk.f32.mxu1 %vm3321_vm2, %v3322_v14  ;;  %v2836_v49 = vld [vmem:[%s3992_s4] ss:$0 sm:$0xff]  ;;  %v2379_v60 = vld [vmem:[%s3581_s16 + $0x18] sm:$0xff] }
 0x91d   : > { %2977 = vmatprep.subr.mxu1 %v3322_v14  ;;  %v3066_v61 = vpack.c.bf16 %v2379_v60, %v2378_v59  ;;  %v2380_v62 = vld [vmem:[%s3581_s16 + $0x20] sm:$0xff] }
 0x91f   : > { %2975 = vmatmul.mubr.msk.f32.vlgmr.msra.gmra.mrb[4].mxu1 %vm1121_vm5, %v1775_v63  ;;  %v2381_v63 = vld [vmem:[%s3581_s16 + $0x28] sm:$0xff] }
 0x920   : > { %2979 = vmatprep.mubr.msk.f32.mxu1 %vm3321_vm2, %v3322_v14  ;;  %2978 = vmatpush3.msra.mxu1 %v958_v58  ;;  %v3069_v58 = vpack.c.bf16 %v2381_v63, %v2380_v62 }
 0x921   : > { %2992 = vmatprep.subr.mxu1 %v3322_v14 }
 0x9a8   : > { %v2085_v0 = vpop.xlane.xlu1 %2084 }
 0x9a9   : > { %v2086_v2 = vsub.f32 %v2082_v54, %v2085_v0  ;;  %v2376_v54 = vld [vmem:[%s3581_s16] sm:$0xff]  ;;  %v2382_v0 = vld [vmem:[%s3581_s16 + $0x30] sm:$0xff] }
 0x9aa   : > { %v3063_v56 = vpack.c.bf16 %v2377_v55, %v2376_v54  ;;  %v2842_v55 = vld [vmem:[%s3997_s7] ss:$0 sm:$0xff] (!%p2840_p1) }
 0x9ab   : > { %v2087_v3 = vmul.f32 1.442695, %v2086_v2  ;;  %v2383_v2 = vld [vmem:[%s3581_s16 + $0x38] sm:$0xff] }
 0x9ad   : > { %3212 = vpow2.f32 %v2087_v3  ;;  %v3072_v3 = vpack.c.bf16 %v2383_v2, %v2382_v0 }
 0x9b7   : > { %v3213_v4 = vpop.eup %3212 }
 0x9b8   : > { %v2089_v5 = vsel %vm1121_vm5, %v3213_v4, 0.0 }
 0x9b9   : > { %2090 = vadd.xlane.f32.xlu1 %v2089_v5  ;;  %v2385_v5 = vld [vmem:[%s3581_s16 + $0x48] sm:$0xff] }
 0x9ca   : > { %2094 = vrot.lane.b32.xlu1 %v3634_v29, %s3343_s30 }
 0x9ee   : > { %v1603_v8 = vpop.f32.mrb[2].mxu1 }
 0x9ef   : > { %v1607_v9 = vadd.f32 %v1603_v8, %v1289_v7  ;;  %v2961_v10 = vpop.f32.mrb[3].mxu1  ;;  %v2386_v7 = vld [vmem:[%s3581_s16 + $0x50] sm:$0xff]  ;;  %v2387_v8 = vld [vmem:[%s3581_s16 + $0x58] sm:$0xff] }
 0x9f0   : > { %v2388_v10 = vld [vmem:[%s3581_s16 + $0x60] sm:$0xff] }
 0x9f2   : > { %v1848_v12 = vpop.f32.mrb[4].mxu1 }
 0x9f3   : > { %v2976_v13 = vpop.f32.mrb[5].mxu1  ;;  %2980 = vmatmul.mubr.msk.f32.vlgmr.msra.gmra.mrb[6].mxu1 %vm1121_vm5, %v1848_v12  ;;  %v2389_v12 = vld [vmem:[%s3581_s16 + $0x68] sm:$0xff] }
 0x9f4   : > { %2994 = vmatprep.mubr.msk.f32.mxu1 %vm3321_vm2, %v3322_v14  ;;  %v3081_v13 = vpack.c.bf16 %v2389_v12, %v2388_v10 }
 0xa46   : > { %v2091_v15 = vpop.xlane.xlu1 %2090 }
 0xa47   : > { %3214 = vrcp.f32 %v2091_v15  ;;  %v2390_v15 = vld [vmem:[%s3581_s16 + $0x70] sm:$0xff] }
 0xa4a   : > { %v2095_v29 = vpop.permute.xlu1 %2094 }
 0xa4b   : > { %2993 = vmatpush3.msra.mxu1 %v2095_v29  ;;  %v2391_v29 = vld [vmem:[%s3581_s16 + $0x78] sm:$0xff] }
 0xa4c   : > { %2997 = vmatprep.subr.mxu1 %v3322_v14 }
 0xa51   : > { %v3215_v16 = vpop.eup %3214 }
 0xa52   : > { %v2093_v17 = vmul.f32 %v3215_v16, %v3213_v4  ;;  %v2384_v4 = vld [vmem:[%s3581_s16 + $0x40] sm:$0xff]  ;;  %v3084_v16 = vpack.c.bf16 %v2391_v29, %v2390_v15 }
 0xa53   : > { %v3075_v6 = vpack.c.bf16 %v2385_v5, %v2384_v4 }
 0xa54   : > { %2995 = vmatmul.mubr.msk.f32.vlgmr.msra.gmra.mrb[8].mxu1 %vm1121_vm5, %v2093_v17  ;;  %v2286_v17 = vsub.s32 0, %v3667_v57 }
 0xa55   : > { %2999 = vmatprep.mubr.msk.f32.mxu1 %vm3321_vm2, %v3322_v14  ;;  %2998 = vmatpush3.msra.mxu1 %v959_v18  ;;  %v2282_v18 = vld [vmem:[%s3571_s2] sm:$0x3] }
 0xa56   : > { %3062 = vmatprep.subr.bf16.mxu1 %v3320_v11 }
 0xac6   : > { %v1921_v19 = vpop.f32.mrb[6].mxu1 }
 0xac7   : > { %v1925_v20 = vadd.f32 %v1921_v19, %v1607_v9  ;;  %v2981_v21 = vpop.f32.mrb[7].mxu1  ;;  %v3078_v9 = vpack.c.bf16 %v2387_v8, %v2386_v7  ;;  %v2287_v19 = vrot.slane %v2282_v18, %v2286_v17 }
 0xb27   : > { %v2166_v22 = vpop.f32.mrb[8].mxu1 }
 0xb28   : > { %v2996_v23 = vpop.f32.mrb[9].mxu1  ;;  %3000 = vmatmul.mubr.msk.f32.vlgmr.msra.gmra.mrb[10].mxu1 %vm1121_vm5, %v2166_v22 }
 0xb29   : > { %3034 = vmatprep.mubr.msk.f32.mxu1 %vm3321_vm2, %v3322_v14  ;;  %3064 = vmatpush3.bf16.msra.mxu1 %v3063_v56 }
 0xb2a   : > { %3065 = vmatprep.subr.bf16.mxu1 %v3320_v11 }
 0xb2d   : > { %3067 = vmatpush3.bf16.msra.mxu1 %v3066_v61 }
 0xb2e   : > { %3068 = vmatprep.subr.bf16.mxu1 %v3320_v11 }
 0xb31   : > { %3070 = vmatpush3.bf16.msra.mxu1 %v3069_v58 }
 0xb32   : > { %3071 = vmatprep.subr.bf16.mxu1 %v3320_v11 }
 0xb35   : > { %3073 = vmatpush3.bf16.msra.mxu1 %v3072_v3 }
 0xb36   : > { %3074 = vmatprep.subr.bf16.mxu1 %v3320_v11 }
 0xb39   : > { %3076 = vmatpush3.bf16.msra.mxu1 %v3075_v6 }
 0xb3a   : > { %3077 = vmatprep.subr.bf16.mxu1 %v3320_v11 }
 0xb3d   : > { %3079 = vmatpush3.bf16.msra.mxu1 %v3078_v9 }
 0xb3e   : > { %3080 = vmatprep.subr.bf16.mxu1 %v3320_v11 }
 0xb41   : > { %3082 = vmatpush3.bf16.msra.mxu1 %v3081_v13 }
 0xb42   : > { %3083 = vmatprep.subr.bf16.mxu1 %v3320_v11  ;;  %v2290_v11 = vsub.s32 1, %v3667_v57 }
 0xb45   : > { %3085 = vmatpush3.bf16.msra.mxu1 %v3084_v16 }
 0xbfb   : > { %v2239_v24 = vpop.f32.mrb[10].mxu1 }
 0xbfc   : > { %v2243_v25 = vadd.f32 %v2239_v24, %v1925_v20  ;;  %v3001_v26 = vpop.f32.mrb[11].mxu1 }
 0xbfe   : > { %v3783_v27 = vadd.f32 %v2243_v25, %v3585_v1  ;;  %v3054_v1 = vpack.c.bf16 %v2277_v35, %v2275_v34 }
 0xc00   : > { %v2247_v28 = vsel %vm788_vm1, %v3783_v27, 0.0  ;;  %3055 = vmatprep.subr.bf16.mxu0 %v3054_v1 }
 0xc01   : > { %2248 = vadd.xlane.f32.xlu0 %v2247_v28  ;;  %3057 = vmatpush1.bf16.msra.mxu0 %v3056_v38  ;;  %v2291_v28 = vrot.slane %v2282_v18, %v2290_v11 }
 0xc02   : > { %3059 = vmatprep.subr.bf16.mxu0 %v3058_v41 }
 0xc05   : > { %3061 = vmatpush1.bf16.msra.mxu0 %v3060_v44  ;;  %v3344_v44 = vmov (!%p2840_p1), 0.0|0.0  }
 0xc06   : > { %3086 = vmatprep.subr.bf16.mxu0 (!%p2840_p1), %v3344_v44 }
 0xc8e   : > { %v2249_v30 = vpop.xlane.xlu0 %2248 }
 0xc8f   : > { %v2250_v31 = vmul.f32 0.03125, %v2249_v30 }
 0xc91   : > { %v2251_v32 = vsub.f32 %v3783_v27, %v2250_v31 }
 0xc93   : > { %v2252_v14 = vmul.f32 %v2251_v32, %v2251_v32 }
 0xc95   : > { %v2253_v33 = vsel %vm788_vm1, %v2252_v14, 0.0 }
 0xc96   : > { %2254 = vadd.xlane.f32.xlu1 %v2253_v33  ;;  %v2839_v33 = vld [vmem:[%s777_s24] ss:$0 sm:$0xff] }
 0xd23   : > { %v2255_v45 = vpop.xlane.xlu1 %2254 }
 0xd24   : > { %v2256_v46 = vmul.f32 0.03125, %v2255_v45 }
 0xd26   : > { %v2257_v47 = vadd.f32 1e-05, %v2256_v46  ;;  %v2507_v46 = vld [vmem:[%s3995_s22 + $0x18] sm:$0xff] (!%p2840_p1) }
 0xd28   : > { %3216 = vrsqrt.f32 %v2257_v47  ;;  %v3346_v47 = vmov (!%p2840_p1), 0.0  }
 0xd32   : > { %v3217_v48 = vpop.eup %3216 }
 0xd33   : > { %v2259_v50 = vmul.f32 %v3217_v48, %v2251_v32  ;;  %v3090_v48 = vpack.c.bf16 (!%p2840_p1), %v2507_v46, %v2506_v43 }
 0xd35   : > { %v2266_v52 = vmul.f32 %v2836_v49, %v2259_v50 }
 0xd37   : > { %v2273_v53 = vadd.f32 %v2837_v51, %v2266_v52 }
 0xd39   : > { %2838 = vmatmul.mubr.msk.f32.vlgmr.msra.gmra.mrb[14].mxu0 %vm788_vm1, %v2273_v53  ;;  %v2841_v53 = vld [vmem:[%s3996_s29] ss:$0 sm:$0xff] (!%p2840_p1) }
 0xd3a   : > { %3045 = vmatprep.mubr.msk.f32.mxu0 (!%p2840_p1), %vm3345_vm6, %v3346_v47 }
 0xe0c   : > { %v2363_v20 = vpop.f32.mrb[14].mxu0 }
 0xe0d   : > { %v2364_v21 = vadd.f32 %v2363_v20, %v2287_v19  ;;  %v2365_v22 = vpop.f32.mrb[15].mxu0 }
 0xe0e   : > { %v2366_v32 = vadd.f32 %v2365_v22, %v2291_v28 }
 0xe0f   : > { %v2368_v23 = vsub.f32 0.0, %v2364_v21 }
 0xe11   : > { %v2369_v24 = vmul.f32 1.442695, %v2368_v23 }
 0xe13   : > { %3218 = vpow2.f32 %v2369_v24 }
 0xe1d   : > { %v3219_v25 = vpop.eup %3218 }
 0xe1e   : > { %v2371_v26 = vadd.f32 1.0, %v3219_v25 }
 0xe20   : > { %3220 = vrcp.f32 %v2371_v26 }
 0xe2a   : > { %v3221_v30 = vpop.eup %3220 }
 0xe2b   : > { %v2374_v31 = vmul.f32 %v3221_v30, %v2364_v21 }
 0xe2d   : > { %v2375_v14 = vmul.f32 %v2374_v31, %v2366_v32 }
 0xe2f   : > { %3035 = vmatmul.mubr.f32.vlgmr.msra.gmra.mrb[12].mxu1 %v2375_v14 }
 0xf01   : > { %2474 = sbr.rel (%p2840_p1) target bundleno = 4373 (0x1115), region = 100 }
 0xf02   : > { %v2465_v34 = vpop.f32.mrb[12].mxu1 }
 0xf03   : > { %v2466_v35 = vadd.f32 %v2839_v33, %v2465_v34  ;;  %v3036_v1 = vpop.f32.mrb[13].mxu1 }
 0xf05   : > { %v2469_v36 = vadd.f32 %v2466_v35, %v3783_v27  ;;  %v2505_v27 = vld [vmem:[%s3995_s22 + $0x8] sm:$0xff] (!%p2840_p1) }
 0xf06   : > { %v3087_v45 = vpack.c.bf16 (!%p2840_p1), %v2505_v27, %v2504_v42 }
 0xf07   : > { %2470 = vst.msk [vmem:[#allocation2] sm:$0xff] %vm788_vm1, %v2469_v36  ;;  %v2477_v57 = vsel (!%p2840_p1), %vm788_vm1, %v2469_v36, 0.0 }
 0xf08   : > { %2478 = vadd.xlane.f32.xlu0 %v2477_v57  ;;  %3088 = vmatpush3.bf16.msra.mxu0 %v3087_v45 }
 0xf09   : > { %3089 = vmatprep.subr.bf16.mxu0 %v3344_v44 }
 0xf0c   : > { %3091 = vmatpush3.bf16.msra.mxu0 %v3090_v48 }
 0xf95   : > { %v2479_v37 = vpop.xlane.xlu0 %2478 }
 0xf96   : > { %v2480_v38 = vmul.f32 0.03125, %v2479_v37 }
 0xf98   : > { %v2481_v39 = vsub.f32 %v2469_v36, %v2480_v38 }
 0xf9a   : > { %v2482_v40 = vmul.f32 %v2481_v39, %v2481_v39 }
 0xf9c   : > { %v2483_v41 = vsel %vm788_vm1, %v2482_v40, 0.0 }
 0xf9d   : > { %2484 = vadd.xlane.f32.xlu0 %v2483_v41 }
0x102a   : > { %v2485_v49 = vpop.xlane.xlu0 %2484 }
0x102b   : > { %v2486_v50 = vmul.f32 0.03125, %v2485_v49 }
0x102d   : > { %v2487_v51 = vadd.f32 1e-05, %v2486_v50 }
0x102f   : > { %3222 = vrsqrt.f32 %v2487_v51 }
0x1039   : > { %v3223_v52 = vpop.eup %3222 }
0x103a   : > { %v2489_v54 = vmul.f32 %v3223_v52, %v2481_v39 }
0x103c   : > { %v2496_v56 = vmul.f32 %v2841_v53, %v2489_v54 }
0x103e   : > { %v2503_v59 = vadd.f32 %v2842_v55, %v2496_v56 }
0x1040   : > { %3046 = vmatmul.mubr.msk.f32.vlgmr.msra.gmra.mrb[0].mxu0 %vm788_vm1, %v2503_v59 }
0x1113   : > { %v2577_v60 = vpop.f32.mrb[0].mxu0 }
0x1114   : > { %2582 = vst.msk [vmem:[%s728_s5] sm:$0xff] %vm2581_vm7, %v2577_v60  ;;  %v3047_v61 = vpop.f32.mrb[1].mxu0 }
0x1115 PF: > { %s3998_s1 = sld [smem:[#allocation10_spill]]  ;;  %s3999_s17 = sld [smem:[#allocation7_spill]] }
0x1116   : > { %s4001_s24 = sld [smem:[#allocation28_spill]]  ;;  %s2597_s18 = sshll.u32 %s728_s5, 4  ;;  %s2598_s18 = int_to_ptr.vmem [resolvable:$true] %s2597_s18 }
0x1117   : > { %s3224_s30 = scalar_lea.vmem %s2598_s18, 128  ;;  %s3347_s26 = smov [#allocation3]  }
0x1118   : > { %p3225_p2 = scmp.ne.s32.totalorder %s2598_s18, %s3224_s30  ;;  %s3228_s21 = sshll.u32 %s3347_s26, 4  ;;  %s3229_s21 = int_to_ptr.vmem [resolvable:$false] %s3228_s21 }
0x1119   : > { %s3230_s28 = scalar_lea.vmem %s3229_s21, 256  ;;  %p3231_p6 = scmp.lt.s32.totalorder %s2598_s18, %s3229_s21 }
0x111a   : > { %p3226_p4 = pnand %p3225_p2, %p3492_p3  ;;  %p3232_p7 = scmp.lt.s32.totalorder %s3230_s28, %s3224_s30 }
0x111b   : > { %s2845_s16 = sshll.u32 %s3998_s1, 7  ;;  %s4002_s25 = sand.u32 1, %s3999_s17  }
0x111c   : > { %s3869_s23 = scalar_lea.hbm %s4001_s24, %s2845_s16  ;;  %s2584_s0 = scalar_lea.sflag [#allocation4], %s4002_s25 }
0x111d   : > { %p3227_p5 = pneg %p3226_p4  ;;  %p3233_p8 = por %p3232_p7, %p3231_p6 }
0x111f   : > { %p3234_p10 = pnand %p3233_p8, %p3227_p5 }
0x1121   : > { %3237 = shalt.err (!%p3234_p10)
}
0x1122   : > { %s3238_s5 = scalar_lea.hbm %s3869_s23, 128  ;;  %s3242_s15 = scalar_lea.hbm %s4001_s24, 256 }
0x1123   : > { %p3239_p11 = scmp.ne.s32.totalorder %s3869_s23, %s3238_s5  ;;  %p3243_p0 = scmp.lt.u32.totalorder %s3869_s23, %s4001_s24 }
0x1124   : > { %p3244_p1 = scmp.lt.u32.totalorder %s3242_s15, %s3238_s5  ;;  %p3246_p4 = scmp.lt.u32.totalorder %s3238_s5, %s3869_s23 }
0x1125   : > { %p3240_p12 = pnand %p3239_p11, %p3492_p3 }
0x1126   : > { %p3245_p2 = por %p3244_p1, %p3243_p0 }
0x1127   : > { %p3241_p13 = pneg %p3240_p12 }
0x1128   : > { %p3247_p5 = por %p3246_p4, %p3245_p2 }
0x112a   : > { %p3248_p6 = pnand %p3247_p5, %p3241_p13 }
0x112c   : > { %3251 = shalt.err (!%p3248_p6)
}
0x112d   : > { %3100 = dma.vmem_to_hbm [thread:$0]  (%p3492_p3), %s2598_s18, 128, %s3869_s23, %s2584_s0  }
0x112e PF: > { %s4003_s1 = sld [smem:[#allocation13_spill]]  ;;  %s4004_s17 = sld [smem:[#allocation6_spill]] }
0x1134   : > { %p3106_p7 = scmp.ge.s32.totalorder %s4003_s1, 2  ;;  %s2609_s20 = sand.u32 1, %s4004_s17  }
0x1135   : > { %s2610_s27 = scalar_lea.sflag [#allocation4], %s2609_s20 }
0x1136   : > { %p3103_p8 = pnand %p3106_p7, %p3502_p9 }
0x1138   : > { %3285 = dma.done.wait (!%p3103_p8), %s2610_s27, 128  }
0x1139   : > { %3287 = vsyncadd (!%p3103_p8), %s2610_s27, 4294967168  ;;  %s31_s20 = sadd.s32 1, %s4003_s1   ;;  %s4006_s27 = sld [smem:[#allocation7_spill]] }
0x113a   : > { %p28_p10 = scmp.ge.s32.totalorder %s31_s20, 6   ;;  %s4007_s28 = sld [smem:[#allocation8_spill]] }
0x113b   : > { %s4008_s29 = sld [smem:[#allocation18_spill]]  ;;  %s4009_s30 = sld [smem:[#allocation11_spill]] }
0x113c   : > { %s4010_s0 = sld [smem:[#allocation12_spill]]  ;;  %s4011_s19 = sld [smem:[#allocation14_spill]] }
0x113d   : > { %s4012_s1 = sld [smem:[#allocation16_spill]]  ;;  %30 = sbr.rel (!%p28_p10) target bundleno = 16 (0x10), region = 171 }
0x1144   :  { %2615 = vsyncpa [#allocation4], 1 }
0x1145   :  { %2617 = vsyncpa [#allocation4 + $0x1], 1 }

</bundles_post_ra>
